<compile_context>
chip_gen: v5e
topology: v5e:2x2
jax: 0.10.0
libtpu: 0.0.40
codegen_flags: <defaults>
</compile_context>

<pallas_src>
import jax
import jax.numpy as jnp
from jax import lax
from jax.experimental import pallas as pl
from jax.experimental.pallas import tpu as pltpu

DIM = 32          # hidden dim
GROUPS = 4        # nn.GroupNorm(dim // 8, dim)
CPG = DIM // GROUPS
MID_LAYERS = 3    # layers - 2
EPS = 1e-5        # GroupNorm default eps


def _ccnet_kernel(x_ref, w0_ref, b0_ref, wm_ref, bm_ref, w4_ref, b4_ref,
                  gamma_ref, beta_ref, pmat_ref, o_ref):
    hw = x_ref.shape[2]
    hw_f = jnp.float32(hw)
    cnt = jnp.float32(hw * CPG)
    pmat = pmat_ref[...]                                     # (DIM, DIM) same-group mask

    def conv_gn_relu(h, w, b, gamma, beta):
        # 1x1 conv == channel matmul on the MXU (DEFAULT precision: bf16 in, f32 acc)
        y = jnp.dot(w, h, preferred_element_type=jnp.float32)   # (DIM, HW)

        # per-channel sums over pixels (lane-axis reduce -> XLU)
        s_c = jnp.sum(y, axis=1, keepdims=True)                 # (DIM, 1)
        ss_c = jnp.sum(y * y, axis=1, keepdims=True)            # (DIM, 1)

        # fold the conv bias into the statistics analytically
        s_b = s_c + hw_f * b                                    # sum of (y + b)
        ss_b = ss_c + 2.0 * b * s_c + hw_f * b * b              # sum of (y + b)^2

        # group-reduce + broadcast back to channels in one tiny dot:
        # (P @ v)[c] = sum over channels in group(c)
        sum_gc = jnp.dot(pmat, s_b, preferred_element_type=jnp.float32)   # (DIM, 1)
        ss_gc = jnp.dot(pmat, ss_b, preferred_element_type=jnp.float32)   # (DIM, 1)

        mean_c = sum_gc / cnt
        var_c = jnp.maximum(ss_gc / cnt - mean_c * mean_c, 0.0)
        inv_c = lax.rsqrt(var_c + EPS)

        # fold GroupNorm affine + conv bias into one scale/bias pass
        scale_c = inv_c * gamma                                  # (DIM, 1)
        bias_c = beta + (b - mean_c) * scale_c                   # (DIM, 1)
        return jnp.maximum(y * scale_c + bias_c, 0.0)            # (DIM, HW)

    h = x_ref[0]                                                 # (Cin, HW)
    h = conv_gn_relu(h, w0_ref[...], b0_ref[...], gamma_ref[0], beta_ref[0])
    for l in range(MID_LAYERS):                                  # static unrolled loop
        h = conv_gn_relu(h, wm_ref[l], bm_ref[l],
                         gamma_ref[l + 1], beta_ref[l + 1])
    # final block: conv1x1, no norm, tanh
    y = jnp.dot(w4_ref[...], h, preferred_element_type=jnp.float32) + b4_ref[...]
    o_ref[0] = jnp.tanh(y)


def ccnet_forward(x_nchw, params):
    w0, b0, wm, bm, w4, b4, gamma, beta = params
    n, cin, h, w = x_nchw.shape
    hw = h * w
    cout = w4.shape[0]
    x = x_nchw.reshape(n, cin, hw)                       # pure reshape, no transpose

    # same-group membership matrix, built once on the host
    ch_i = jnp.arange(DIM)[:, None] // CPG
    ch_j = jnp.arange(DIM)[None, :] // CPG
    pmat = (ch_i == ch_j).astype(jnp.float32)            # (DIM, DIM)

    def full_spec(a):
        nd = a.ndim
        return pl.BlockSpec(a.shape, lambda i, _nd=nd: (0,) * _nd)

    # explicit VMEM budget: activations/temporaries + double-buffered io blocks
    act_bytes = DIM * hw * 4
    blk_bytes = 8 * hw * 4                               # sublane-padded in/out block
    vmem_limit = int(min(64 * 2**20, max(8 * 2**20, 6 * act_bytes + 4 * blk_bytes + (2 << 20))))

    out = pl.pallas_call(
        _ccnet_kernel,
        out_shape=jax.ShapeDtypeStruct((n, cout, hw), jnp.float32),
        grid=(n,),
        in_specs=[
            pl.BlockSpec((1, cin, hw), lambda i: (i, 0, 0)),
            full_spec(w0), full_spec(b0), full_spec(wm), full_spec(bm),
            full_spec(w4), full_spec(b4), full_spec(gamma), full_spec(beta),
            full_spec(pmat),
        ],
        out_specs=pl.BlockSpec((1, cout, hw), lambda i: (i, 0, 0)),
        compiler_params=pltpu.CompilerParams(
            dimension_semantics=("parallel",),
            vmem_limit_bytes=vmem_limit),
    )(x, w0, b0, wm, bm, w4, b4, gamma, beta, pmat)

    return out.reshape(n, cout, h, w)


def ccnet_reference(x_nchw, params):
    """Pure-JAX reference with identical math (for verification)."""
    w0, b0, wm, bm, w4, b4, gamma, beta = params
    n, cin, h, w = x_nchw.shape
    hw = h * w
    x = x_nchw.reshape(n, cin, hw)

    def block(hc, wt, bt, g, bta):
        y = jnp.einsum('dc,ncp->ndp', wt, hc) + bt               # (n, DIM, hw)
        yg = y.reshape(n, GROUPS, CPG, hw)
        mean = yg.mean(axis=(2, 3), keepdims=True)
        var = ((yg - mean) ** 2).mean(axis=(2, 3), keepdims=True)
        yn = ((yg - mean) / jnp.sqrt(var + EPS)).reshape(n, DIM, hw)
        return jnp.maximum(yn * g + bta, 0.0)

    hc = block(x, w0, b0, gamma[0], beta[0])
    for l in range(MID_LAYERS):
        hc = block(hc, wm[l], bm[l], gamma[l + 1], beta[l + 1])
    y = jnp.tanh(jnp.einsum('dc,ncp->ndp', w4, hc) + b4)
    return y.reshape(n, -1, h, w)


def make_params():
    """Deterministic parameter init. Weights stored as (Cout, Cin) for w @ x."""
    ks = jax.random.split(jax.random.PRNGKey(0), 6)
    w0 = jax.random.normal(ks[0], (DIM, 3), jnp.float32) * 0.2
    b0 = jax.random.normal(ks[1], (DIM, 1), jnp.float32) * 0.1
    wm = jax.random.normal(ks[2], (MID_LAYERS, DIM, DIM), jnp.float32) * 0.2
    bm = jax.random.normal(ks[3], (MID_LAYERS, DIM, 1), jnp.float32) * 0.1
    w4 = jax.random.normal(ks[4], (3, DIM), jnp.float32) * 0.2
    b4 = jax.random.normal(ks[5], (3, 1), jnp.float32) * 0.1
    gamma = jnp.ones((1 + MID_LAYERS, DIM, 1), jnp.float32)   # GroupNorm affine defaults
    beta = jnp.zeros((1 + MID_LAYERS, DIM, 1), jnp.float32)
    return (w0, b0, wm, bm, w4, b4, gamma, beta)


if __name__ == "__main__":
    params = make_params()
    x = jax.random.normal(jax.random.PRNGKey(1), (2, 3, 16, 16), jnp.float32)

    out = ccnet_forward(x, params)
    out = jax.block_until_ready(out)

    ref = jax.block_until_ready(ccnet_reference(x, params))
    assert out.shape == (2, 3, 16, 16), out.shape
    assert jnp.allclose(out, ref, atol=5e-3, rtol=5e-3), \
        float(jnp.max(jnp.abs(out - ref)))

    print("KERNEL_OK")
</pallas_src>

<mosaic_0001>
module attributes {stable_mosaic.version = 11 : i64} {
  func.func @_ccnet_kernel(%arg0: i32, %arg1: memref<1x3x256xf32, #tpu.memory_space<vmem>>, %arg2: memref<32x3xf32, #tpu.memory_space<vmem>>, %arg3: memref<32x1xf32, #tpu.memory_space<vmem>>, %arg4: memref<3x32x32xf32, #tpu.memory_space<vmem>>, %arg5: memref<3x32x1xf32, #tpu.memory_space<vmem>>, %arg6: memref<3x32xf32, #tpu.memory_space<vmem>>, %arg7: memref<3x1xf32, #tpu.memory_space<vmem>>, %arg8: memref<4x32x1xf32, #tpu.memory_space<vmem>>, %arg9: memref<4x32x1xf32, #tpu.memory_space<vmem>>, %arg10: memref<32x32xf32, #tpu.memory_space<vmem>>, %arg11: memref<1x3x256xf32, #tpu.memory_space<vmem>>) attributes {dimension_semantics = [#tpu.dimension_semantics<parallel>], iteration_bounds = array<i64: 2>, scalar_prefetch = 0 : i64, scratch_operands = 0 : i64, tpu.core_type = #tpu.core_type<tc>, window_params = [{transform_indices = @transform_0, window_bounds = array<i64: 1, 3, 256>}, {pipeline_mode = #tpu.pipeline_mode<synchronous>, transform_indices = @transform_1, window_bounds = array<i64: 32, 3>}, {pipeline_mode = #tpu.pipeline_mode<synchronous>, transform_indices = @transform_2, window_bounds = array<i64: 32, 1>}, {pipeline_mode = #tpu.pipeline_mode<synchronous>, transform_indices = @transform_3, window_bounds = array<i64: 3, 32, 32>}, {pipeline_mode = #tpu.pipeline_mode<synchronous>, transform_indices = @transform_4, window_bounds = array<i64: 3, 32, 1>}, {pipeline_mode = #tpu.pipeline_mode<synchronous>, transform_indices = @transform_5, window_bounds = array<i64: 3, 32>}, {pipeline_mode = #tpu.pipeline_mode<synchronous>, transform_indices = @transform_6, window_bounds = array<i64: 3, 1>}, {pipeline_mode = #tpu.pipeline_mode<synchronous>, transform_indices = @transform_7, window_bounds = array<i64: 4, 32, 1>}, {pipeline_mode = #tpu.pipeline_mode<synchronous>, transform_indices = @transform_8, window_bounds = array<i64: 4, 32, 1>}, {pipeline_mode = #tpu.pipeline_mode<synchronous>, transform_indices = @transform_9, window_bounds = array<i64: 32, 32>}, {transform_indices = @transform_10, window_bounds = array<i64: 1, 3, 256>}]} {
    %c0 = arith.constant 0 : index
    %c0_0 = arith.constant 0 : index
    %0 = vector.load %arg10[%c0, %c0_0] : memref<32x32xf32, #tpu.memory_space<vmem>>, vector<32x32xf32>
    %c0_1 = arith.constant 0 : index
    %c0_2 = arith.constant 0 : index
    %c0_3 = arith.constant 0 : index
    %1 = vector.load %arg1[%c0_1, %c0_2, %c0_3] : memref<1x3x256xf32, #tpu.memory_space<vmem>>, vector<1x3x256xf32>
    %2 = vector.shape_cast %1 : vector<1x3x256xf32> to vector<3x256xf32>
    %c0_4 = arith.constant 0 : index
    %c0_5 = arith.constant 0 : index
    %3 = vector.load %arg2[%c0_4, %c0_5] : memref<32x3xf32, #tpu.memory_space<vmem>>, vector<32x3xf32>
    %c0_6 = arith.constant 0 : index
    %c0_7 = arith.constant 0 : index
    %4 = vector.load %arg3[%c0_6, %c0_7] : memref<32x1xf32, #tpu.memory_space<vmem>>, vector<32x1xf32>
    %c0_8 = arith.constant 0 : index
    %c0_9 = arith.constant 0 : index
    %c0_10 = arith.constant 0 : index
    %5 = vector.load %arg8[%c0_8, %c0_9, %c0_10] : memref<4x32x1xf32, #tpu.memory_space<vmem>>, vector<1x32x1xf32>
    %6 = vector.shape_cast %5 : vector<1x32x1xf32> to vector<32x1xf32>
    %c0_11 = arith.constant 0 : index
    %c0_12 = arith.constant 0 : index
    %c0_13 = arith.constant 0 : index
    %7 = vector.load %arg9[%c0_11, %c0_12, %c0_13] : memref<4x32x1xf32, #tpu.memory_space<vmem>>, vector<1x32x1xf32>
    %8 = vector.shape_cast %7 : vector<1x32x1xf32> to vector<32x1xf32>
    %cst = arith.constant dense<0.000000e+00> : vector<32x256xf32>
    %9 = tpu.matmul %3, %2, %cst {dimension_numbers = #tpu.dot_dimension_numbers<[1], [0], [0], [1], [0, 0, 1, 1], [], []>} : vector<32x3xf32>, vector<3x256xf32>, vector<32x256xf32> -> vector<32x256xf32>
    %cst_14 = arith.constant dense<0.000000e+00> : vector<32xf32>
    %10 = vector.multi_reduction <add>, %9, %cst_14 [1] : vector<32x256xf32> to vector<32xf32>
    %11 = vector.shape_cast %10 : vector<32xf32> to vector<32x1xf32>
    %12 = arith.mulf %9, %9 : vector<32x256xf32>
    %cst_15 = arith.constant dense<0.000000e+00> : vector<32xf32>
    %13 = vector.multi_reduction <add>, %12, %cst_15 [1] : vector<32x256xf32> to vector<32xf32>
    %14 = vector.shape_cast %13 : vector<32xf32> to vector<32x1xf32>
    %cst_16 = arith.constant 2.560000e+02 : f32
    %15 = vector.broadcast %cst_16 : f32 to vector<32x1xf32>
    %16 = arith.mulf %15, %4 : vector<32x1xf32>
    %17 = arith.addf %11, %16 : vector<32x1xf32>
    %cst_17 = arith.constant 2.000000e+00 : f32
    %18 = vector.broadcast %cst_17 : f32 to vector<32x1xf32>
    %19 = arith.mulf %18, %4 : vector<32x1xf32>
    %20 = arith.mulf %19, %11 : vector<32x1xf32>
    %21 = arith.addf %14, %20 : vector<32x1xf32>
    %cst_18 = arith.constant 2.560000e+02 : f32
    %22 = vector.broadcast %cst_18 : f32 to vector<32x1xf32>
    %23 = arith.mulf %22, %4 : vector<32x1xf32>
    %24 = arith.mulf %23, %4 : vector<32x1xf32>
    %25 = arith.addf %21, %24 : vector<32x1xf32>
    %cst_19 = arith.constant dense<0.000000e+00> : vector<32x1xf32>
    %26 = tpu.matmul %0, %17, %cst_19 {dimension_numbers = #tpu.dot_dimension_numbers<[1], [0], [0], [1], [0, 0, 1, 1], [], []>} : vector<32x32xf32>, vector<32x1xf32>, vector<32x1xf32> -> vector<32x1xf32>
    %cst_20 = arith.constant dense<0.000000e+00> : vector<32x1xf32>
    %27 = tpu.matmul %0, %25, %cst_20 {dimension_numbers = #tpu.dot_dimension_numbers<[1], [0], [0], [1], [0, 0, 1, 1], [], []>} : vector<32x32xf32>, vector<32x1xf32>, vector<32x1xf32> -> vector<32x1xf32>
    %cst_21 = arith.constant 2.048000e+03 : f32
    %28 = vector.broadcast %cst_21 : f32 to vector<32x1xf32>
    %29 = arith.divf %26, %28 : vector<32x1xf32>
    %cst_22 = arith.constant 2.048000e+03 : f32
    %30 = vector.broadcast %cst_22 : f32 to vector<32x1xf32>
    %31 = arith.divf %27, %30 : vector<32x1xf32>
    %32 = arith.mulf %29, %29 : vector<32x1xf32>
    %33 = arith.subf %31, %32 : vector<32x1xf32>
    %cst_23 = arith.constant 0.000000e+00 : f32
    %34 = vector.broadcast %cst_23 : f32 to vector<32x1xf32>
    %35 = arith.maximumf %33, %34 : vector<32x1xf32>
    %cst_24 = arith.constant 9.99999974E-6 : f32
    %36 = vector.broadcast %cst_24 : f32 to vector<32x1xf32>
    %37 = arith.addf %35, %36 : vector<32x1xf32>
    %38 = math.rsqrt %37 : vector<32x1xf32>
    %39 = arith.mulf %38, %6 : vector<32x1xf32>
    %40 = arith.subf %4, %29 : vector<32x1xf32>
    %41 = arith.mulf %40, %39 : vector<32x1xf32>
    %42 = arith.addf %8, %41 : vector<32x1xf32>
    %43 = vector.broadcast %39 : vector<32x1xf32> to vector<32x256xf32>
    %44 = arith.mulf %9, %43 : vector<32x256xf32>
    %45 = vector.broadcast %42 : vector<32x1xf32> to vector<32x256xf32>
    %46 = arith.addf %44, %45 : vector<32x256xf32>
    %cst_25 = arith.constant 0.000000e+00 : f32
    %47 = vector.broadcast %cst_25 : f32 to vector<32x256xf32>
    %48 = arith.maximumf %46, %47 : vector<32x256xf32>
    %c0_26 = arith.constant 0 : index
    %c0_27 = arith.constant 0 : index
    %c0_28 = arith.constant 0 : index
    %49 = vector.load %arg4[%c0_26, %c0_27, %c0_28] : memref<3x32x32xf32, #tpu.memory_space<vmem>>, vector<1x32x32xf32>
    %50 = vector.shape_cast %49 : vector<1x32x32xf32> to vector<32x32xf32>
    %c0_29 = arith.constant 0 : index
    %c0_30 = arith.constant 0 : index
    %c0_31 = arith.constant 0 : index
    %51 = vector.load %arg5[%c0_29, %c0_30, %c0_31] : memref<3x32x1xf32, #tpu.memory_space<vmem>>, vector<1x32x1xf32>
    %52 = vector.shape_cast %51 : vector<1x32x1xf32> to vector<32x1xf32>
    %c1 = arith.constant 1 : index
    %c0_32 = arith.constant 0 : index
    %c0_33 = arith.constant 0 : index
    %53 = vector.load %arg8[%c1, %c0_32, %c0_33] : memref<4x32x1xf32, #tpu.memory_space<vmem>>, vector<1x32x1xf32>
    %54 = vector.shape_cast %53 : vector<1x32x1xf32> to vector<32x1xf32>
    %c1_34 = arith.constant 1 : index
    %c0_35 = arith.constant 0 : index
    %c0_36 = arith.constant 0 : index
    %55 = vector.load %arg9[%c1_34, %c0_35, %c0_36] : memref<4x32x1xf32, #tpu.memory_space<vmem>>, vector<1x32x1xf32>
    %56 = vector.shape_cast %55 : vector<1x32x1xf32> to vector<32x1xf32>
    %cst_37 = arith.constant dense<0.000000e+00> : vector<32x256xf32>
    %57 = tpu.matmul %50, %48, %cst_37 {dimension_numbers = #tpu.dot_dimension_numbers<[1], [0], [0], [1], [0, 0, 1, 1], [], []>} : vector<32x32xf32>, vector<32x256xf32>, vector<32x256xf32> -> vector<32x256xf32>
    %cst_38 = arith.constant dense<0.000000e+00> : vector<32xf32>
    %58 = vector.multi_reduction <add>, %57, %cst_38 [1] : vector<32x256xf32> to vector<32xf32>
    %59 = vector.shape_cast %58 : vector<32xf32> to vector<32x1xf32>
    %60 = arith.mulf %57, %57 : vector<32x256xf32>
    %cst_39 = arith.constant dense<0.000000e+00> : vector<32xf32>
    %61 = vector.multi_reduction <add>, %60, %cst_39 [1] : vector<32x256xf32> to vector<32xf32>
    %62 = vector.shape_cast %61 : vector<32xf32> to vector<32x1xf32>
    %cst_40 = arith.constant 2.560000e+02 : f32
    %63 = vector.broadcast %cst_40 : f32 to vector<32x1xf32>
    %64 = arith.mulf %63, %52 : vector<32x1xf32>
    %65 = arith.addf %59, %64 : vector<32x1xf32>
    %cst_41 = arith.constant 2.000000e+00 : f32
    %66 = vector.broadcast %cst_41 : f32 to vector<32x1xf32>
    %67 = arith.mulf %66, %52 : vector<32x1xf32>
    %68 = arith.mulf %67, %59 : vector<32x1xf32>
    %69 = arith.addf %62, %68 : vector<32x1xf32>
    %cst_42 = arith.constant 2.560000e+02 : f32
    %70 = vector.broadcast %cst_42 : f32 to vector<32x1xf32>
    %71 = arith.mulf %70, %52 : vector<32x1xf32>
    %72 = arith.mulf %71, %52 : vector<32x1xf32>
    %73 = arith.addf %69, %72 : vector<32x1xf32>
    %cst_43 = arith.constant dense<0.000000e+00> : vector<32x1xf32>
    %74 = tpu.matmul %0, %65, %cst_43 {dimension_numbers = #tpu.dot_dimension_numbers<[1], [0], [0], [1], [0, 0, 1, 1], [], []>} : vector<32x32xf32>, vector<32x1xf32>, vector<32x1xf32> -> vector<32x1xf32>
    %cst_44 = arith.constant dense<0.000000e+00> : vector<32x1xf32>
    %75 = tpu.matmul %0, %73, %cst_44 {dimension_numbers = #tpu.dot_dimension_numbers<[1], [0], [0], [1], [0, 0, 1, 1], [], []>} : vector<32x32xf32>, vector<32x1xf32>, vector<32x1xf32> -> vector<32x1xf32>
    %cst_45 = arith.constant 2.048000e+03 : f32
    %76 = vector.broadcast %cst_45 : f32 to vector<32x1xf32>
    %77 = arith.divf %74, %76 : vector<32x1xf32>
    %cst_46 = arith.constant 2.048000e+03 : f32
    %78 = vector.broadcast %cst_46 : f32 to vector<32x1xf32>
    %79 = arith.divf %75, %78 : vector<32x1xf32>
    %80 = arith.mulf %77, %77 : vector<32x1xf32>
    %81 = arith.subf %79, %80 : vector<32x1xf32>
    %cst_47 = arith.constant 0.000000e+00 : f32
    %82 = vector.broadcast %cst_47 : f32 to vector<32x1xf32>
    %83 = arith.maximumf %81, %82 : vector<32x1xf32>
    %cst_48 = arith.constant 9.99999974E-6 : f32
    %84 = vector.broadcast %cst_48 : f32 to vector<32x1xf32>
    %85 = arith.addf %83, %84 : vector<32x1xf32>
    %86 = math.rsqrt %85 : vector<32x1xf32>
    %87 = arith.mulf %86, %54 : vector<32x1xf32>
    %88 = arith.subf %52, %77 : vector<32x1xf32>
    %89 = arith.mulf %88, %87 : vector<32x1xf32>
    %90 = arith.addf %56, %89 : vector<32x1xf32>
    %91 = vector.broadcast %87 : vector<32x1xf32> to vector<32x256xf32>
    %92 = arith.mulf %57, %91 : vector<32x256xf32>
    %93 = vector.broadcast %90 : vector<32x1xf32> to vector<32x256xf32>
    %94 = arith.addf %92, %93 : vector<32x256xf32>
    %cst_49 = arith.constant 0.000000e+00 : f32
    %95 = vector.broadcast %cst_49 : f32 to vector<32x256xf32>
    %96 = arith.maximumf %94, %95 : vector<32x256xf32>
    %c1_50 = arith.constant 1 : index
    %c0_51 = arith.constant 0 : index
    %c0_52 = arith.constant 0 : index
    %97 = vector.load %arg4[%c1_50, %c0_51, %c0_52] : memref<3x32x32xf32, #tpu.memory_space<vmem>>, vector<1x32x32xf32>
    %98 = vector.shape_cast %97 : vector<1x32x32xf32> to vector<32x32xf32>
    %c1_53 = arith.constant 1 : index
    %c0_54 = arith.constant 0 : index
    %c0_55 = arith.constant 0 : index
    %99 = vector.load %arg5[%c1_53, %c0_54, %c0_55] : memref<3x32x1xf32, #tpu.memory_space<vmem>>, vector<1x32x1xf32>
    %100 = vector.shape_cast %99 : vector<1x32x1xf32> to vector<32x1xf32>
    %c2 = arith.constant 2 : index
    %c0_56 = arith.constant 0 : index
    %c0_57 = arith.constant 0 : index
    %101 = vector.load %arg8[%c2, %c0_56, %c0_57] : memref<4x32x1xf32, #tpu.memory_space<vmem>>, vector<1x32x1xf32>
    %102 = vector.shape_cast %101 : vector<1x32x1xf32> to vector<32x1xf32>
    %c2_58 = arith.constant 2 : index
    %c0_59 = arith.constant 0 : index
    %c0_60 = arith.constant 0 : index
    %103 = vector.load %arg9[%c2_58, %c0_59, %c0_60] : memref<4x32x1xf32, #tpu.memory_space<vmem>>, vector<1x32x1xf32>
    %104 = vector.shape_cast %103 : vector<1x32x1xf32> to vector<32x1xf32>
    %cst_61 = arith.constant dense<0.000000e+00> : vector<32x256xf32>
    %105 = tpu.matmul %98, %96, %cst_61 {dimension_numbers = #tpu.dot_dimension_numbers<[1], [0], [0], [1], [0, 0, 1, 1], [], []>} : vector<32x32xf32>, vector<32x256xf32>, vector<32x256xf32> -> vector<32x256xf32>
    %cst_62 = arith.constant dense<0.000000e+00> : vector<32xf32>
    %106 = vector.multi_reduction <add>, %105, %cst_62 [1] : vector<32x256xf32> to vector<32xf32>
    %107 = vector.shape_cast %106 : vector<32xf32> to vector<32x1xf32>
    %108 = arith.mulf %105, %105 : vector<32x256xf32>
    %cst_63 = arith.constant dense<0.000000e+00> : vector<32xf32>
    %109 = vector.multi_reduction <add>, %108, %cst_63 [1] : vector<32x256xf32> to vector<32xf32>
    %110 = vector.shape_cast %109 : vector<32xf32> to vector<32x1xf32>
    %cst_64 = arith.constant 2.560000e+02 : f32
    %111 = vector.broadcast %cst_64 : f32 to vector<32x1xf32>
    %112 = arith.mulf %111, %100 : vector<32x1xf32>
    %113 = arith.addf %107, %112 : vector<32x1xf32>
    %cst_65 = arith.constant 2.000000e+00 : f32
    %114 = vector.broadcast %cst_65 : f32 to vector<32x1xf32>
    %115 = arith.mulf %114, %100 : vector<32x1xf32>
    %116 = arith.mulf %115, %107 : vector<32x1xf32>
    %117 = arith.addf %110, %116 : vector<32x1xf32>
    %cst_66 = arith.constant 2.560000e+02 : f32
    %118 = vector.broadcast %cst_66 : f32 to vector<32x1xf32>
    %119 = arith.mulf %118, %100 : vector<32x1xf32>
    %120 = arith.mulf %119, %100 : vector<32x1xf32>
    %121 = arith.addf %117, %120 : vector<32x1xf32>
    %cst_67 = arith.constant dense<0.000000e+00> : vector<32x1xf32>
    %122 = tpu.matmul %0, %113, %cst_67 {dimension_numbers = #tpu.dot_dimension_numbers<[1], [0], [0], [1], [0, 0, 1, 1], [], []>} : vector<32x32xf32>, vector<32x1xf32>, vector<32x1xf32> -> vector<32x1xf32>
    %cst_68 = arith.constant dense<0.000000e+00> : vector<32x1xf32>
    %123 = tpu.matmul %0, %121, %cst_68 {dimension_numbers = #tpu.dot_dimension_numbers<[1], [0], [0], [1], [0, 0, 1, 1], [], []>} : vector<32x32xf32>, vector<32x1xf32>, vector<32x1xf32> -> vector<32x1xf32>
    %cst_69 = arith.constant 2.048000e+03 : f32
    %124 = vector.broadcast %cst_69 : f32 to vector<32x1xf32>
    %125 = arith.divf %122, %124 : vector<32x1xf32>
    %cst_70 = arith.constant 2.048000e+03 : f32
    %126 = vector.broadcast %cst_70 : f32 to vector<32x1xf32>
    %127 = arith.divf %123, %126 : vector<32x1xf32>
    %128 = arith.mulf %125, %125 : vector<32x1xf32>
    %129 = arith.subf %127, %128 : vector<32x1xf32>
    %cst_71 = arith.constant 0.000000e+00 : f32
    %130 = vector.broadcast %cst_71 : f32 to vector<32x1xf32>
    %131 = arith.maximumf %129, %130 : vector<32x1xf32>
    %cst_72 = arith.constant 9.99999974E-6 : f32
    %132 = vector.broadcast %cst_72 : f32 to vector<32x1xf32>
    %133 = arith.addf %131, %132 : vector<32x1xf32>
    %134 = math.rsqrt %133 : vector<32x1xf32>
    %135 = arith.mulf %134, %102 : vector<32x1xf32>
    %136 = arith.subf %100, %125 : vector<32x1xf32>
    %137 = arith.mulf %136, %135 : vector<32x1xf32>
    %138 = arith.addf %104, %137 : vector<32x1xf32>
    %139 = vector.broadcast %135 : vector<32x1xf32> to vector<32x256xf32>
    %140 = arith.mulf %105, %139 : vector<32x256xf32>
    %141 = vector.broadcast %138 : vector<32x1xf32> to vector<32x256xf32>
    %142 = arith.addf %140, %141 : vector<32x256xf32>
    %cst_73 = arith.constant 0.000000e+00 : f32
    %143 = vector.broadcast %cst_73 : f32 to vector<32x256xf32>
    %144 = arith.maximumf %142, %143 : vector<32x256xf32>
    %c2_74 = arith.constant 2 : index
    %c0_75 = arith.constant 0 : index
    %c0_76 = arith.constant 0 : index
    %145 = vector.load %arg4[%c2_74, %c0_75, %c0_76] : memref<3x32x32xf32, #tpu.memory_space<vmem>>, vector<1x32x32xf32>
    %146 = vector.shape_cast %145 : vector<1x32x32xf32> to vector<32x32xf32>
    %c2_77 = arith.constant 2 : index
    %c0_78 = arith.constant 0 : index
    %c0_79 = arith.constant 0 : index
    %147 = vector.load %arg5[%c2_77, %c0_78, %c0_79] : memref<3x32x1xf32, #tpu.memory_space<vmem>>, vector<1x32x1xf32>
    %148 = vector.shape_cast %147 : vector<1x32x1xf32> to vector<32x1xf32>
    %c3 = arith.constant 3 : index
    %c0_80 = arith.constant 0 : index
    %c0_81 = arith.constant 0 : index
    %149 = vector.load %arg8[%c3, %c0_80, %c0_81] : memref<4x32x1xf32, #tpu.memory_space<vmem>>, vector<1x32x1xf32>
    %150 = vector.shape_cast %149 : vector<1x32x1xf32> to vector<32x1xf32>
    %c3_82 = arith.constant 3 : index
    %c0_83 = arith.constant 0 : index
    %c0_84 = arith.constant 0 : index
    %151 = vector.load %arg9[%c3_82, %c0_83, %c0_84] : memref<4x32x1xf32, #tpu.memory_space<vmem>>, vector<1x32x1xf32>
    %152 = vector.shape_cast %151 : vector<1x32x1xf32> to vector<32x1xf32>
    %cst_85 = arith.constant dense<0.000000e+00> : vector<32x256xf32>
    %153 = tpu.matmul %146, %144, %cst_85 {dimension_numbers = #tpu.dot_dimension_numbers<[1], [0], [0], [1], [0, 0, 1, 1], [], []>} : vector<32x32xf32>, vector<32x256xf32>, vector<32x256xf32> -> vector<32x256xf32>
    %cst_86 = arith.constant dense<0.000000e+00> : vector<32xf32>
    %154 = vector.multi_reduction <add>, %153, %cst_86 [1] : vector<32x256xf32> to vector<32xf32>
    %155 = vector.shape_cast %154 : vector<32xf32> to vector<32x1xf32>
    %156 = arith.mulf %153, %153 : vector<32x256xf32>
    %cst_87 = arith.constant dense<0.000000e+00> : vector<32xf32>
    %157 = vector.multi_reduction <add>, %156, %cst_87 [1] : vector<32x256xf32> to vector<32xf32>
    %158 = vector.shape_cast %157 : vector<32xf32> to vector<32x1xf32>
    %cst_88 = arith.constant 2.560000e+02 : f32
    %159 = vector.broadcast %cst_88 : f32 to vector<32x1xf32>
    %160 = arith.mulf %159, %148 : vector<32x1xf32>
    %161 = arith.addf %155, %160 : vector<32x1xf32>
    %cst_89 = arith.constant 2.000000e+00 : f32
    %162 = vector.broadcast %cst_89 : f32 to vector<32x1xf32>
    %163 = arith.mulf %162, %148 : vector<32x1xf32>
    %164 = arith.mulf %163, %155 : vector<32x1xf32>
    %165 = arith.addf %158, %164 : vector<32x1xf32>
    %cst_90 = arith.constant 2.560000e+02 : f32
    %166 = vector.broadcast %cst_90 : f32 to vector<32x1xf32>
    %167 = arith.mulf %166, %148 : vector<32x1xf32>
    %168 = arith.mulf %167, %148 : vector<32x1xf32>
    %169 = arith.addf %165, %168 : vector<32x1xf32>
    %cst_91 = arith.constant dense<0.000000e+00> : vector<32x1xf32>
    %170 = tpu.matmul %0, %161, %cst_91 {dimension_numbers = #tpu.dot_dimension_numbers<[1], [0], [0], [1], [0, 0, 1, 1], [], []>} : vector<32x32xf32>, vector<32x1xf32>, vector<32x1xf32> -> vector<32x1xf32>
    %cst_92 = arith.constant dense<0.000000e+00> : vector<32x1xf32>
    %171 = tpu.matmul %0, %169, %cst_92 {dimension_numbers = #tpu.dot_dimension_numbers<[1], [0], [0], [1], [0, 0, 1, 1], [], []>} : vector<32x32xf32>, vector<32x1xf32>, vector<32x1xf32> -> vector<32x1xf32>
    %cst_93 = arith.constant 2.048000e+03 : f32
    %172 = vector.broadcast %cst_93 : f32 to vector<32x1xf32>
    %173 = arith.divf %170, %172 : vector<32x1xf32>
    %cst_94 = arith.constant 2.048000e+03 : f32
    %174 = vector.broadcast %cst_94 : f32 to vector<32x1xf32>
    %175 = arith.divf %171, %174 : vector<32x1xf32>
    %176 = arith.mulf %173, %173 : vector<32x1xf32>
    %177 = arith.subf %175, %176 : vector<32x1xf32>
    %cst_95 = arith.constant 0.000000e+00 : f32
    %178 = vector.broadcast %cst_95 : f32 to vector<32x1xf32>
    %179 = arith.maximumf %177, %178 : vector<32x1xf32>
    %cst_96 = arith.constant 9.99999974E-6 : f32
    %180 = vector.broadcast %cst_96 : f32 to vector<32x1xf32>
    %181 = arith.addf %179, %180 : vector<32x1xf32>
    %182 = math.rsqrt %181 : vector<32x1xf32>
    %183 = arith.mulf %182, %150 : vector<32x1xf32>
    %184 = arith.subf %148, %173 : vector<32x1xf32>
    %185 = arith.mulf %184, %183 : vector<32x1xf32>
    %186 = arith.addf %152, %185 : vector<32x1xf32>
    %187 = vector.broadcast %183 : vector<32x1xf32> to vector<32x256xf32>
    %188 = arith.mulf %153, %187 : vector<32x256xf32>
    %189 = vector.broadcast %186 : vector<32x1xf32> to vector<32x256xf32>
    %190 = arith.addf %188, %189 : vector<32x256xf32>
    %cst_97 = arith.constant 0.000000e+00 : f32
    %191 = vector.broadcast %cst_97 : f32 to vector<32x256xf32>
    %192 = arith.maximumf %190, %191 : vector<32x256xf32>
    %c0_98 = arith.constant 0 : index
    %c0_99 = arith.constant 0 : index
    %193 = vector.load %arg6[%c0_98, %c0_99] : memref<3x32xf32, #tpu.memory_space<vmem>>, vector<3x32xf32>
    %cst_100 = arith.constant dense<0.000000e+00> : vector<3x256xf32>
    %194 = tpu.matmul %193, %192, %cst_100 {dimension_numbers = #tpu.dot_dimension_numbers<[1], [0], [0], [1], [0, 0, 1, 1], [], []>} : vector<3x32xf32>, vector<32x256xf32>, vector<3x256xf32> -> vector<3x256xf32>
    %c0_101 = arith.constant 0 : index
    %c0_102 = arith.constant 0 : index
    %195 = vector.load %arg7[%c0_101, %c0_102] : memref<3x1xf32, #tpu.memory_space<vmem>>, vector<3x1xf32>
    %196 = vector.broadcast %195 : vector<3x1xf32> to vector<3x256xf32>
    %197 = arith.addf %194, %196 : vector<3x256xf32>
    %198 = math.tanh %197 : vector<3x256xf32>
    %c0_103 = arith.constant 0 : index
    %c0_104 = arith.constant 0 : index
    %c0_105 = arith.constant 0 : index
    %199 = vector.load %arg11[%c0_103, %c0_104, %c0_105] : memref<1x3x256xf32, #tpu.memory_space<vmem>>, vector<1x3x256xf32>
    %200 = vector.shape_cast %199 : vector<1x3x256xf32> to vector<3x256xf32>
    %201 = vector.shape_cast %198 : vector<3x256xf32> to vector<1x3x256xf32>
    tpu.vector_store %arg11[%c0_103, %c0_104, %c0_105], %201 {strides = array<i32>} : memref<1x3x256xf32, #tpu.memory_space<vmem>>, vector<1x3x256xf32>,
    return
  }
  func.func @transform_0(%arg0: i32) -> (i32, i32, i32) {
    %c0_i32 = arith.constant 0 : i32
    %c0_i32_0 = arith.constant 0 : i32
    %c0_i32_1 = arith.constant 0 : i32
    return %arg0, %c0_i32, %c0_i32_0 : i32, i32, i32
  }
  func.func @transform_1(%arg0: i32) -> (i32, i32) {
    %c0_i32 = arith.constant 0 : i32
    %c0_i32_0 = arith.constant 0 : i32
    %c0_i32_1 = arith.constant 0 : i32
    return %c0_i32, %c0_i32_0 : i32, i32
  }
  func.func @transform_2(%arg0: i32) -> (i32, i32) {
    %c0_i32 = arith.constant 0 : i32
    %c0_i32_0 = arith.constant 0 : i32
    %c0_i32_1 = arith.constant 0 : i32
    return %c0_i32, %c0_i32_0 : i32, i32
  }
  func.func @transform_3(%arg0: i32) -> (i32, i32, i32) {
    %c0_i32 = arith.constant 0 : i32
    %c0_i32_0 = arith.constant 0 : i32
    %c0_i32_1 = arith.constant 0 : i32
    %c0_i32_2 = arith.constant 0 : i32
    return %c0_i32, %c0_i32_0, %c0_i32_1 : i32, i32, i32
  }
  func.func @transform_4(%arg0: i32) -> (i32, i32, i32) {
    %c0_i32 = arith.constant 0 : i32
    %c0_i32_0 = arith.constant 0 : i32
    %c0_i32_1 = arith.constant 0 : i32
    %c0_i32_2 = arith.constant 0 : i32
    return %c0_i32, %c0_i32_0, %c0_i32_1 : i32, i32, i32
  }
  func.func @transform_5(%arg0: i32) -> (i32, i32) {
    %c0_i32 = arith.constant 0 : i32
    %c0_i32_0 = arith.constant 0 : i32
    %c0_i32_1 = arith.constant 0 : i32
    return %c0_i32, %c0_i32_0 : i32, i32
  }
  func.func @transform_6(%arg0: i32) -> (i32, i32) {
    %c0_i32 = arith.constant 0 : i32
    %c0_i32_0 = arith.constant 0 : i32
    %c0_i32_1 = arith.constant 0 : i32
    return %c0_i32, %c0_i32_0 : i32, i32
  }
  func.func @transform_7(%arg0: i32) -> (i32, i32, i32) {
    %c0_i32 = arith.constant 0 : i32
    %c0_i32_0 = arith.constant 0 : i32
    %c0_i32_1 = arith.constant 0 : i32
    %c0_i32_2 = arith.constant 0 : i32
    return %c0_i32, %c0_i32_0, %c0_i32_1 : i32, i32, i32
  }
  func.func @transform_8(%arg0: i32) -> (i32, i32, i32) {
    %c0_i32 = arith.constant 0 : i32
    %c0_i32_0 = arith.constant 0 : i32
    %c0_i32_1 = arith.constant 0 : i32
    %c0_i32_2 = arith.constant 0 : i32
    return %c0_i32, %c0_i32_0, %c0_i32_1 : i32, i32, i32
  }
  func.func @transform_9(%arg0: i32) -> (i32, i32) {
    %c0_i32 = arith.constant 0 : i32
    %c0_i32_0 = arith.constant 0 : i32
    %c0_i32_1 = arith.constant 0 : i32
    return %c0_i32, %c0_i32_0 : i32, i32
  }
  func.func @transform_10(%arg0: i32) -> (i32, i32, i32) {
    %c0_i32 = arith.constant 0 : i32
    %c0_i32_0 = arith.constant 0 : i32
    %c0_i32_1 = arith.constant 0 : i32
    return %arg0, %c0_i32, %c0_i32_0 : i32, i32, i32
  }
}

</mosaic_0001>

<bundles_post_ra>
// kernel: tpu_custom_call.1
= control target key start
LH: loop header
LB: loop body
LE: loop exit
PB: predicated region body
PF: predicated region fallthrough
CT: control target
= control target key end

     0   :  { %s2152_s13 = smov 0   ;;  %s2906_s0 = inlined_call_operand.vmem [shape: f32[2,3,256], index: 0, kind: input, shape index: {}]   ;;  %s2907_s1 = inlined_call_operand.vmem [shape: f32[32,3], index: 1, kind: input, shape index: {}]   ;;  %s2908_s2 = inlined_call_operand.vmem [shape: f32[32,1], index: 2, kind: input, shape index: {}]   ;;  %s2909_s3 = inlined_call_operand.vmem [shape: f32[3,32,32], index: 3, kind: input, shape index: {}]   ;;  %s2910_s4 = inlined_call_operand.vmem [shape: f32[3,32,1], index: 4, kind: input, shape index: {}]   ;;  %s2911_s5 = inlined_call_operand.vmem [shape: f32[3,32], index: 5, kind: input, shape index: {}]   ;;  %s2912_s6 = inlined_call_operand.vmem [shape: f32[3,1], index: 6, kind: input, shape index: {}]   ;;  %s2913_s7 = inlined_call_operand.vmem [shape: f32[4,32,1], index: 7, kind: input, shape index: {}]   ;;  %s2914_s8 = inlined_call_operand.vmem [shape: f32[4,32,1], index: 8, kind: input, shape index: {}]   ;;  %s2915_s9 = inlined_call_operand.vmem [shape: f32[32,32], index: 9, kind: input, shape index: {}]   ;;  %s2916_s10 = inlined_call_operand.vmem [shape: f32[2,3,256], index: 10, kind: output, shape index: {}]  }
   0x1 LB: > { %s1911_s14 = sadd.s32 4294967295, %s2093_s13   ;;  %p1915_p0 = scmp.ge.s32.totalorder %s2093_s13, 1  ;;  %s2093_s13 = sphi %s2152_s13, %s20_s13  }
   0x2   : > { %p312_p1 = scmp.lt.s32.totalorder %s2093_s13, 3 }
   0x4   : > { %p313_p2 = pnand %p1915_p0, %p312_p1 }
   0x5   : > { %p350_p3 = scmp.lt.s32.totalorder (!%p313_p2), %s1911_s14, 1 }
   0x6   : > { %316 = sbr.rel (%p313_p2) target bundleno = 2569 (0xa09), region = 60 }
   0xb   : > { %s2918_s14 = smov (!%p350_p3, %s1911_s14), 1  ;;  %vm398_vm0 = vcmask 1042432   ;;  %v365_v1 = vld [vmem:[%s2907_s1] sm:$0xff]  ;;  %vm385_vm1 = vcmask 23552   ;;  %v366_v4 = vld [vmem:[%s2907_s1 + $0x8] sm:$0xff]  ;;  %v367_v5 = vld [vmem:[%s2907_s1 + $0x10] sm:$0xff] }
   0xc   : > { %s2030_s15 = sshll.u32 %s2918_s14, 3  ;;  %v368_v6 = vld [vmem:[%s2907_s1 + $0x18] sm:$0xff]  ;;  %v2223_v31 = vld [vmem:[%s2908_s2 + $0x10] sm:$0xff]  ;;  %v2236_v39 = vld [vmem:[%s2908_s2 + $0x8] sm:$0xff]  ;;  %vm521_vm2 = vcmask 261120  }
   0xd   : > { %s354_s18 = scalar_lea.vmem %s2906_s0, %s2030_s15  ;;  %v2228_v35 = vld [vmem:[%s2908_s2 + $0x18] sm:$0xff]  ;;  %v503_v36 = vmul.f32 2.0, %v2223_v31  ;;  %v495_v41 = vmul.f32 256.0, %v2223_v31  ;;  %v2242_v43 = vld [vmem:[%s2908_s2] sm:$0xff]  ;;  %v494_v46 = vmul.f32 256.0, %v2236_v39  ;;  %v502_v48 = vmul.f32 2.0, %v2236_v39  ;;  %s359_s16 = scalar_lea.vmem %s2916_s10, %s2030_s15 }
   0xe   : > { %v364_v0 = vld [vmem:[%s354_s18] sm:$0x77]  ;;  %v504_v37 = vmul.f32 2.0, %v2228_v35  ;;  %v496_v38 = vmul.f32 256.0, %v2228_v35  ;;  %v493_v54 = vmul.f32 256.0, %v2242_v43  ;;  %v501_v56 = vmul.f32 2.0, %v2242_v43 }
   0xf   : > { %382 = vst [vmem:[#allocation1] ss:$2 sm:$0xff] %v364_v0  ;;  %v515_v50 = vmul.f32 %v495_v41, %v2223_v31  ;;  %v514_v59 = vmul.f32 %v494_v46, %v2236_v39  ;;  %v2254_v63 = vld [vmem:[%s2915_s9] sm:$0xff] }
  0x10   : > { %v516_v47 = vmul.f32 %v496_v38, %v2228_v35 }
  0x16   : > { %v383_v2 = vld.sshfl [vmem:[#allocation1] sm:$0xff pattern:$0x75316420]  ;;  %v384_v3 = vld.sshfl [vmem:[#allocation1 + $0x8] sm:$0xff pattern:$0x75316420] }
  0x17   : > { %1920 = vmatpush.msk.msra.mxu0 %vm398_vm0, %v383_v2  ;;  %1925 = vmatpush.msk.msra.mxu1 %vm398_vm0, %v384_v3  ;;  %v513_v3 = vmul.f32 %v493_v54, %v2242_v43 }
  0x18   : > { %1921 = vmatmul.msk.f32.vlgmr.msra.gmra.mxu0 %vm385_vm1, %v365_v1  ;;  %1926 = vmatmul.msk.f32.vlgmr.msra.gmra.mxu1 %vm385_vm1, %v365_v1 }
  0x20   : > { %1922 = vmatmul.msk.f32.gmra.mxu0 %vm385_vm1, %v366_v4  ;;  %1927 = vmatmul.msk.f32.gmra.mxu1 %vm385_vm1, %v366_v4 }
  0x28   : > { %1923 = vmatmul.msk.f32.gmra.mxu0 %vm385_vm1, %v367_v5  ;;  %1928 = vmatmul.msk.f32.gmra.mxu1 %vm385_vm1, %v367_v5 }
  0x30   : > { %1924 = vmatmul.msk.f32.gmra.mxu0 %vm385_vm1, %v368_v6  ;;  %1929 = vmatmul.msk.f32.gmra.mxu1 %vm385_vm1, %v368_v6 }
  0x95   : > { %v2180_v7 = vpop.f32.mrf.mxu0  ;;  %v2182_v8 = vpop.f32.mrf.mxu1 }
  0x96   : > { %v461_v23 = vadd.f32 %v2182_v8, %v2180_v7  ;;  %v473_v27 = vmul.f32 %v2180_v7, %v2180_v7  ;;  %v474_v28 = vmul.f32 %v2182_v8, %v2182_v8 }
  0x98   : > { %v481_v30 = vadd.f32 %v474_v28, %v473_v27  ;;  %v2096_v28 = vmov 0  }
  0x99   : > { %2044 = vset.pattern.permute.xlu1 %v2096_v28  ;;  %2043 = vset.pattern.permute.xlu2 %v2096_v28 }
  0x9a   : > { %2042 = vset.pattern.permute.xlu0 %v2096_v28 }
  0x9d   : > { %v2184_v9 = vpop.f32.mrf.mxu0  ;;  %v2186_v10 = vpop.f32.mrf.mxu1 }
  0x9e   : > { %v464_v11 = vadd.f32 %v2186_v10, %v2184_v9  ;;  %v475_v25 = vmul.f32 %v2184_v9, %v2184_v9  ;;  %v476_v26 = vmul.f32 %v2186_v10, %v2186_v10 }
  0xa0   : > { %465 = vadd.xlane.f32.xlu1 %v464_v11  ;;  %v484_v29 = vadd.f32 %v476_v26, %v475_v25 }
  0xa5   : > { %v2190_v12 = vpop.f32.mrf.mxu0  ;;  %v2192_v13 = vpop.f32.mrf.mxu1 }
  0xa6   : > { %v467_v14 = vadd.f32 %v2192_v13, %v2190_v12  ;;  %v477_v15 = vmul.f32 %v2190_v12, %v2190_v12  ;;  %v478_v16 = vmul.f32 %v2192_v13, %v2192_v13 }
  0xa8   : > { %468 = vadd.xlane.f32.xlu0 %v467_v14  ;;  %v487_v17 = vadd.f32 %v478_v16, %v477_v15  ;;  %v2262_v14 = vld [vmem:[%s2915_s9 + $0x8] sm:$0xff]  ;;  %v2271_v15 = vld [vmem:[%s2915_s9 + $0x10] sm:$0xff]  ;;  %v2280_v16 = vld [vmem:[%s2915_s9 + $0x18] sm:$0xff] }
  0xaa   : > { %488 = vadd.xlane.f32.xlu2 %v487_v17  ;;  %v2095_v17 = vmov 2048.0  }
  0xab   : > { %2045 = vrcp.f32 %v2095_v17 }
  0xad   : > { %v2200_v18 = vpop.f32.mrf.mxu0  ;;  %v2202_v19 = vpop.f32.mrf.mxu1 }
  0xae   : > { %v470_v20 = vadd.f32 %v2202_v19, %v2200_v18  ;;  %v479_v21 = vmul.f32 %v2200_v18, %v2200_v18  ;;  %v480_v22 = vmul.f32 %v2202_v19, %v2202_v19 }
  0xb0   : > { %471 = vadd.xlane.f32.xlu0 %v470_v20  ;;  %v490_v24 = vadd.f32 %v480_v22, %v479_v21 }
  0xb1   : > { %v2046_v20 = vpop.eup %2045 }
  0xb2   : > { %462 = vadd.xlane.f32.xlu2 %v461_v23  ;;  %491 = vadd.xlane.f32.xlu1 %v490_v24  ;;  %v593_v21 = vmul.f32 2048.0, %v2046_v20  ;;  %vm597_vm3 = vweird.f32 %v2046_v20 }
  0xb4   : > { %v594_v22 = vsub.f32 1.0, %v593_v21 }
  0xb6   : > { %v595_v23 = vmul.f32 %v2046_v20, %v594_v22 }
  0xb8   : > { %485 = vadd.xlane.f32.xlu0 %v484_v29  ;;  %v596_v24 = vadd.f32 %v2046_v20, %v595_v23 }
  0xba   : > { %482 = vadd.xlane.f32.xlu1 %v481_v30  ;;  %v2288_v25 = vsel %vm597_vm3, %v2046_v20, %v596_v24 }
 0x113   : > { %v466_v33 = vpop.xlane.xlu1 %465 }
 0x114   : > { %v498_v57 = vadd.f32 %v494_v46, %v466_v33  ;;  %v506_v60 = vmul.f32 %v502_v48, %v466_v33 }
 0x11b   : > { %v469_v32 = vpop.xlane.xlu0 %468 }
 0x11c   : > { %v507_v40 = vmul.f32 %v503_v36, %v469_v32  ;;  %v499_v53 = vadd.f32 %v495_v41, %v469_v32 }
 0x11d   : > { %v489_v34 = vpop.xlane.xlu2 %488 }
 0x11e   : > { %v511_v51 = vadd.f32 %v507_v40, %v489_v34 }
 0x120   : > { %v519_v62 = vadd.f32 %v515_v50, %v511_v51 }
 0x123   : > { %v472_v42 = vpop.xlane.xlu0 %471 }
 0x124   : > { %v508_v44 = vmul.f32 %v504_v37, %v472_v42  ;;  %v500_v45 = vadd.f32 %v496_v38, %v472_v42 }
 0x125   : > { %v492_v49 = vpop.xlane.xlu1 %491  ;;  %v463_v55 = vpop.xlane.xlu2 %462 }
 0x126   : > { %v512_v52 = vadd.f32 %v508_v44, %v492_v49  ;;  %546 = vmatpush.msra.mxu2 %v500_v45  ;;  %v497_v61 = vadd.f32 %v493_v54, %v463_v55  ;;  %v505_v1 = vmul.f32 %v501_v56, %v463_v55 }
 0x128   : > { %547 = vmatpush.msra.mxu2 %v499_v53  ;;  %v520_v58 = vadd.f32 %v516_v47, %v512_v52 }
 0x12a   : > { %548 = vmatpush.msra.mxu2 %v498_v57  ;;  %575 = vmatpush.msra.mxu3 %v520_v58 }
 0x12b   : > { %v486_v0 = vpop.xlane.xlu0 %485 }
 0x12c   : > { %v510_v2 = vadd.f32 %v506_v60, %v486_v0  ;;  %549 = vmatpush.msra.mxu2 %v497_v61  ;;  %576 = vmatpush.msra.mxu3 %v519_v62 }
 0x12d   : > { %v483_v4 = vpop.xlane.xlu1 %482  ;;  %1930 = vmatmul.msk.f32.vlgmr.msra.gmra.mxu2 %vm521_vm2, %v2254_v63 }
 0x12e   : > { %v509_v5 = vadd.f32 %v505_v1, %v483_v4  ;;  %v518_v6 = vadd.f32 %v514_v59, %v510_v2 }
 0x130   : > { %577 = vmatpush.msra.mxu3 %v518_v6  ;;  %v517_v11 = vadd.f32 %v513_v3, %v509_v5  ;;  %v373_v3 = vld [vmem:[%s2913_s7] sm:$0xff] }
 0x132   : > { %578 = vmatpush.msra.mxu3 %v517_v11 }
 0x133   : > { %1934 = vmatmul.msk.f32.vlgmr.msra.gmra.mxu3 %vm521_vm2, %v2254_v63 }
 0x135   : > { %1931 = vmatmul.msk.f32.gmra.mxu2 %vm521_vm2, %v2262_v14 }
 0x13b   : > { %1935 = vmatmul.msk.f32.gmra.mxu3 %vm521_vm2, %v2262_v14 }
 0x13d   : > { %1932 = vmatmul.msk.f32.gmra.mxu2 %vm521_vm2, %v2271_v15 }
 0x143   : > { %1936 = vmatmul.msk.f32.gmra.mxu3 %vm521_vm2, %v2271_v15 }
 0x145   : > { %1933 = vmatmul.msk.f32.gmra.mxu2 %vm521_vm2, %v2280_v16 }
 0x14b   : > { %1937 = vmatmul.msk.f32.gmra.mxu3 %vm521_vm2, %v2280_v16 }
 0x1b0   : > { %v551_v26 = vpop.f32.mrf.mxu2 }
 0x1b1   : > { %v2291_v27 = vmul.f32 %v2288_v25, %v551_v26 }
 0x1b3   : > { %v607_v29 = vmul.f32 %v2291_v27, %v2291_v27 }
 0x1b6   : > { %v580_v30 = vpop.f32.mrf.mxu3 }
 0x1b7   : > { %v603_v32 = vmul.f32 %v2288_v25, %v580_v30 }
 0x1b8   : > { %v554_v33 = vpop.f32.mrf.mxu2 }
 0x1b9   : > { %v611_v34 = vsub.f32 %v603_v32, %v607_v29  ;;  %v2297_v36 = vmul.f32 %v2288_v25, %v554_v33  ;;  %v374_v29 = vld [vmem:[%s2913_s7 + $0x8] sm:$0xff] }
 0x1bb   : > { %v615_v37 = vmax.f32 %v611_v34, 0.0  ;;  %v608_v40 = vmul.f32 %v2297_v36, %v2297_v36 }
 0x1bd   : > { %v619_v38 = vadd.f32 1e-05, %v615_v37 }
 0x1be   : > { %v583_v41 = vpop.f32.mrf.mxu3 }
 0x1bf   : > { %2047 = vrsqrt.f32 %v619_v38  ;;  %v604_v42 = vmul.f32 %v2288_v25, %v583_v41  ;;  %vm629_vm5 = vweird.f32 %v619_v38 }
 0x1c0   : > { %v557_v44 = vpop.f32.mrf.mxu2 }
 0x1c1   : > { %v612_v45 = vsub.f32 %v604_v42, %v608_v40  ;;  %v2303_v46 = vmul.f32 %v2288_v25, %v557_v44  ;;  %v375_v42 = vld [vmem:[%s2913_s7 + $0x10] sm:$0xff] }
 0x1c3   : > { %v616_v47 = vmax.f32 %v612_v45, 0.0  ;;  %v609_v50 = vmul.f32 %v2303_v46, %v2303_v46 }
 0x1c5   : > { %v2048_v48 = vpop.eup %2047  ;;  %v620_v49 = vadd.f32 1e-05, %v616_v47 }
 0x1c6   : > { %v624_v51 = vmul.f32 %v2048_v48, %v619_v38  ;;  %v586_v52 = vpop.f32.mrf.mxu3  ;;  %vm630_vm4 = vweird.f32 %v2048_v48 }
 0x1c7   : > { %2049 = vrsqrt.f32 %v620_v49  ;;  %v605_v53 = vmul.f32 %v2288_v25, %v586_v52  ;;  %vm631_vm6 = vmor %vm629_vm5, %vm630_vm4  ;;  %vm639_vm8 = vweird.f32 %v620_v49 }
 0x1c8   : > { %v625_v54 = vmul.f32 %v2048_v48, %v624_v51  ;;  %v560_v55 = vpop.f32.mrf.mxu2  ;;  %v379_v51 = vld [vmem:[%s2914_s8 + $0x10] sm:$0xff] }
 0x1c9   : > { %v613_v56 = vsub.f32 %v605_v53, %v609_v50  ;;  %v2309_v57 = vmul.f32 %v2288_v25, %v560_v55  ;;  %v376_v55 = vld [vmem:[%s2913_s7 + $0x18] sm:$0xff] }
 0x1ca   : > { %v626_v58 = vmul.f32 0.5, %v625_v54 }
 0x1cb   : > { %v617_v59 = vmax.f32 %v613_v56, 0.0  ;;  %v610_v0 = vmul.f32 %v2309_v57, %v2309_v57 }
 0x1cc   : > { %v627_v60 = vsub.f32 1.5, %v626_v58 }
 0x1cd   : > { %v2050_v61 = vpop.eup %2049  ;;  %v621_v62 = vadd.f32 1e-05, %v617_v59  ;;  %v380_v59 = vld [vmem:[%s2914_s8 + $0x18] sm:$0xff] }
 0x1ce   : > { %v634_v1 = vmul.f32 %v2050_v61, %v620_v49  ;;  %v589_v2 = vpop.f32.mrf.mxu3  ;;  %v628_v4 = vmul.f32 %v2048_v48, %v627_v60  ;;  %vm640_vm7 = vweird.f32 %v2050_v61 }
 0x1cf   : > { %2051 = vrsqrt.f32 %v621_v62  ;;  %v606_v5 = vmul.f32 %v2288_v25, %v589_v2  ;;  %vm641_vm9 = vmor %vm639_vm8, %vm640_vm7  ;;  %vm649_vm11 = vweird.f32 %v621_v62 }
 0x1d0   : > { %v635_v6 = vmul.f32 %v2050_v61, %v634_v1  ;;  %v632_v11 = vsel %vm631_vm6, %v2048_v48, %v628_v4  ;;  %v669_v48 = vsub.f32 %v2223_v31, %v2303_v46  ;;  %v670_v46 = vsub.f32 %v2228_v35, %v2309_v57  ;;  %v378_v35 = vld [vmem:[%s2914_s8 + $0x8] sm:$0xff]  ;;  %v377_v57 = vld [vmem:[%s2914_s8] sm:$0xff] }
 0x1d1   : > { %v614_v17 = vsub.f32 %v606_v5, %v610_v0  ;;  %v663_v20 = vmul.f32 %v632_v11, %v373_v3  ;;  %v668_v0 = vsub.f32 %v2236_v39, %v2297_v36 }
 0x1d2   : > { %v636_v21 = vmul.f32 0.5, %v635_v6 }
 0x1d3   : > { %v618_v22 = vmax.f32 %v614_v17, 0.0  ;;  %681 = vperm.xlu1 %2044, %v663_v20  }
 0x1d4   : > { %v637_v23 = vsub.f32 1.5, %v636_v21 }
 0x1d5   : > { %v2052_v24 = vpop.eup %2051  ;;  %v622_v26 = vadd.f32 1e-05, %v618_v22 }
 0x1d6   : > { %v644_v28 = vmul.f32 %v2052_v24, %v621_v62  ;;  %v638_v30 = vmul.f32 %v2050_v61, %v637_v23  ;;  %vm650_vm10 = vweird.f32 %v2052_v24  ;;  %v667_v62 = vsub.f32 %v2242_v43, %v2291_v27 }
 0x1d7   : > { %2053 = vrsqrt.f32 %v622_v26  ;;  %vm651_vm12 = vmor %vm649_vm11, %vm650_vm10  ;;  %vm659_vm14 = vweird.f32 %v622_v26 }
 0x1d8   : > { %v645_v32 = vmul.f32 %v2052_v24, %v644_v28  ;;  %v642_v33 = vsel %vm641_vm9, %v2050_v61, %v638_v30  ;;  %v671_v2 = vmul.f32 %v667_v62, %v663_v20 }
 0x1d9   : > { %v664_v34 = vmul.f32 %v642_v33, %v374_v29 }
 0x1da   : > { %v646_v37 = vmul.f32 0.5, %v645_v32  ;;  %v675_v4 = vadd.f32 %v671_v2, %v377_v57 }
 0x1db   : > { %686 = vperm.xlu2 %2043, %v664_v34   ;;  %v672_v1 = vmul.f32 %v668_v0, %v664_v34 }
 0x1dc   : > { %v647_v38 = vsub.f32 1.5, %v646_v37 }
 0x1dd   : > { %v2054_v40 = vpop.eup %2053  ;;  %v676_v3 = vadd.f32 %v672_v1, %v378_v35 }
 0x1de   : > { %v654_v41 = vmul.f32 %v2054_v40, %v622_v26  ;;  %v648_v44 = vmul.f32 %v2052_v24, %v647_v38  ;;  %vm660_vm13 = vweird.f32 %v2054_v40 }
 0x1df   : > { %vm661_vm15 = vmor %vm659_vm14, %vm660_vm13 }
 0x1e0   : > { %v655_v45 = vmul.f32 %v2054_v40, %v654_v41  ;;  %v652_v47 = vsel %vm651_vm12, %v2052_v24, %v648_v44 }
 0x1e1   : > { %v665_v49 = vmul.f32 %v652_v47, %v375_v42  ;;  %v746_v47 = vld [vmem:[%s2909_s3 + $0x18] sm:$0xff] }
 0x1e2   : > { %v656_v50 = vmul.f32 0.5, %v655_v45  ;;  %v743_v45 = vld [vmem:[%s2909_s3] sm:$0xff] }
 0x1e3   : > { %691 = vperm.xlu0 %2042, %v665_v49   ;;  %v673_v52 = vmul.f32 %v669_v48, %v665_v49 }
 0x1e4   : > { %v657_v53 = vsub.f32 1.5, %v656_v50 }
 0x1e5   : > { %v677_v54 = vadd.f32 %v673_v52, %v379_v51 }
 0x1e6   : > { %v658_v56 = vmul.f32 %v2054_v40, %v657_v53 }
 0x1e7   : > { %719 = vperm.xlu2 %2043, %v677_v54  }
 0x1e8   : > { %v662_v31 = vsel %vm661_vm15, %v2054_v40, %v658_v56 }
 0x1e9   : > { %v666_v58 = vmul.f32 %v662_v31, %v376_v55 }
 0x1eb   : > { %v674_v60 = vmul.f32 %v670_v46, %v666_v58 }
 0x1ed   : > { %v678_v61 = vadd.f32 %v674_v60, %v380_v59 }
 0x1ef   : > { %696 = vperm.xlu2 %2043, %v666_v58   ;;  %724 = vperm.xlu1 %2044, %v678_v61  }
 0x1f7   : > { %714 = vperm.xlu2 %2043, %v676_v3   ;;  %709 = vperm.xlu1 %2044, %v675_v4  }
 0x235   : > { %v687_v43 = vpop.permute.xlu2 %686 }
 0x236   : > { %v701_v21 = vmul.f32 %v687_v43, %v2184_v9  ;;  %v702_v22 = vmul.f32 %v687_v43, %v2186_v10 }
 0x241   : > { %v720_v27 = vpop.permute.xlu2 %719 }
 0x245   : > { %v682_v39 = vpop.permute.xlu1 %681 }
 0x246   : > { %v700_v9 = vmul.f32 %v682_v39, %v2182_v8  ;;  %v745_v8 = vld [vmem:[%s2909_s3 + $0x10] sm:$0xff] }
 0x249   : > { %v697_v5 = vpop.permute.xlu2 %696 }
 0x24a   : > { %v705_v17 = vmul.f32 %v697_v5, %v2200_v18  ;;  %v706_v20 = vmul.f32 %v697_v5, %v2202_v19  ;;  %v699_v19 = vmul.f32 %v682_v39, %v2180_v7  ;;  %v744_v7 = vld [vmem:[%s2909_s3 + $0x8] sm:$0xff]  ;;  %v2417_v5 = vld [vmem:[%s2910_s4 + $0x10] sm:$0xff] }
 0x251   : > { %v715_v23 = vpop.permute.xlu2 %714 }
 0x252   : > { %v729_v32 = vadd.f32 %v715_v23, %v701_v21  ;;  %v730_v33 = vadd.f32 %v715_v23, %v702_v22 }
 0x254   : > { %v737_v10 = vmax.f32 %v729_v32, 0.0  ;;  %v738_v37 = vmax.f32 %v730_v33, 0.0 }
 0x255   : > { %v692_v36 = vpop.permute.xlu0 %691 }
 0x256   : > { %v703_v6 = vmul.f32 %v692_v36, %v2190_v12  ;;  %v704_v11 = vmul.f32 %v692_v36, %v2192_v13 }
 0x258   : > { %v731_v29 = vadd.f32 %v720_v27, %v703_v6  ;;  %v732_v30 = vadd.f32 %v720_v27, %v704_v11  ;;  %v2422_v6 = vld [vmem:[%s2910_s4 + $0x18] sm:$0xff]  ;;  %v873_v11 = vmul.f32 2.0, %v2417_v5 }
 0x259   : > { %v866_v21 = vmul.f32 256.0, %v2422_v6 }
 0x25a   : > { %v739_v13 = vmax.f32 %v731_v29, 0.0  ;;  %v740_v18 = vmax.f32 %v732_v30, 0.0 }
 0x25b   : > { %v886_v33 = vmul.f32 %v866_v21, %v2422_v6 }
 0x261   : > { %v725_v24 = vpop.permute.xlu1 %724 }
 0x262   : > { %v733_v26 = vadd.f32 %v725_v24, %v705_v17  ;;  %v734_v28 = vadd.f32 %v725_v24, %v706_v20  ;;  %v2428_v17 = vld [vmem:[%s2910_s4 + $0x8] sm:$0xff]  ;;  %v874_v20 = vmul.f32 2.0, %v2422_v6  ;;  %v865_v24 = vmul.f32 256.0, %v2417_v5 }
 0x263   : > { %v872_v22 = vmul.f32 2.0, %v2428_v17  ;;  %v864_v32 = vmul.f32 256.0, %v2428_v17 }
 0x264   : > { %v741_v34 = vmax.f32 %v733_v26, 0.0  ;;  %v742_v12 = vmax.f32 %v734_v28, 0.0 }
 0x266   : > { %785 = vmatpush.msrb.mxu0 %v741_v34  ;;  %814 = vmatpush.msrb.mxu1 %v742_v12  ;;  %v2439_v34 = vld [vmem:[%s2910_s4] sm:$0xff] }
 0x268   : > { %786 = vmatpush.msrb.mxu0 %v739_v13  ;;  %815 = vmatpush.msrb.mxu1 %v740_v18  ;;  %v885_v13 = vmul.f32 %v865_v24, %v2417_v5 }
 0x269   : > { %v710_v38 = vpop.permute.xlu1 %709 }
 0x26a   : > { %v727_v40 = vadd.f32 %v710_v38, %v699_v19  ;;  %v728_v41 = vadd.f32 %v710_v38, %v700_v9  ;;  %787 = vmatpush.msrb.mxu0 %v737_v10  ;;  %816 = vmatpush.msrb.mxu1 %v738_v37  ;;  %v871_v37 = vmul.f32 2.0, %v2439_v34  ;;  %v884_v38 = vmul.f32 %v864_v32, %v2428_v17 }
 0x26c   : > { %v735_v42 = vmax.f32 %v727_v40, 0.0  ;;  %v736_v44 = vmax.f32 %v728_v41, 0.0 }
 0x26e   : > { %788 = vmatpush.msrb.mxu0 %v735_v42  ;;  %817 = vmatpush.msrb.mxu1 %v736_v44  ;;  %v863_v44 = vmul.f32 256.0, %v2439_v34 }
 0x26f   : > { %1946 = vmatmul.msk.f32.vlgmr.msrb.gmra.mxu0 %vm521_vm2, %v743_v45  ;;  %1950 = vmatmul.msk.f32.vlgmr.msrb.gmra.mxu1 %vm521_vm2, %v743_v45 }
 0x277   : > { %1947 = vmatmul.msk.f32.gmra.mxu0 %vm521_vm2, %v744_v7  ;;  %1951 = vmatmul.msk.f32.gmra.mxu1 %vm521_vm2, %v744_v7 }
 0x27f   : > { %1948 = vmatmul.msk.f32.gmra.mxu0 %vm521_vm2, %v745_v8  ;;  %1952 = vmatmul.msk.f32.gmra.mxu1 %vm521_vm2, %v745_v8 }
 0x287   : > { %1949 = vmatmul.msk.f32.gmra.mxu0 %vm521_vm2, %v746_v47  ;;  %1953 = vmatmul.msk.f32.gmra.mxu1 %vm521_vm2, %v746_v47 }
 0x2ec   : > { %v2374_v48 = vpop.f32.mrf.mxu0  ;;  %v2376_v49 = vpop.f32.mrf.mxu1 }
 0x2ed   : > { %v843_v57 = vmul.f32 %v2374_v48, %v2374_v48  ;;  %v844_v3 = vmul.f32 %v2376_v49, %v2376_v49  ;;  %v831_v4 = vadd.f32 %v2376_v49, %v2374_v48 }
 0x2ef   : > { %v851_v43 = vadd.f32 %v844_v3, %v843_v57 }
 0x2f4   : > { %v2378_v50 = vpop.f32.mrf.mxu0  ;;  %v2380_v51 = vpop.f32.mrf.mxu1 }
 0x2f5   : > { %v834_v52 = vadd.f32 %v2380_v51, %v2378_v50  ;;  %v845_v58 = vmul.f32 %v2378_v50, %v2378_v50  ;;  %v846_v59 = vmul.f32 %v2380_v51, %v2380_v51 }
 0x2f7   : > { %835 = vadd.xlane.f32.xlu2 %v834_v52  ;;  %v854_v62 = vadd.f32 %v846_v59, %v845_v58 }
 0x2fc   : > { %v2384_v53 = vpop.f32.mrf.mxu0  ;;  %v2386_v54 = vpop.f32.mrf.mxu1 }
 0x2fd   : > { %v837_v55 = vadd.f32 %v2386_v54, %v2384_v53  ;;  %v847_v56 = vmul.f32 %v2384_v53, %v2384_v53  ;;  %v848_v31 = vmul.f32 %v2386_v54, %v2386_v54 }
 0x2ff   : > { %838 = vadd.xlane.f32.xlu2 %v837_v55  ;;  %v857_v46 = vadd.f32 %v848_v31, %v847_v56  ;;  %v883_v55 = vmul.f32 %v863_v44, %v2439_v34 }
 0x301   : > { %858 = vadd.xlane.f32.xlu0 %v857_v46 }
 0x304   : > { %v2398_v60 = vpop.f32.mrf.mxu0  ;;  %v2400_v61 = vpop.f32.mrf.mxu1 }
 0x305   : > { %v849_v0 = vmul.f32 %v2398_v60, %v2398_v60  ;;  %v850_v1 = vmul.f32 %v2400_v61, %v2400_v61  ;;  %v840_v35 = vadd.f32 %v2400_v61, %v2398_v60 }
 0x307   : > { %855 = vadd.xlane.f32.xlu2 %v854_v62  ;;  %v860_v2 = vadd.f32 %v850_v1, %v849_v0 }
 0x309   : > { %861 = vadd.xlane.f32.xlu1 %v860_v2  ;;  %841 = vadd.xlane.f32.xlu0 %v840_v35 }
 0x311   : > { %832 = vadd.xlane.f32.xlu1 %v831_v4  ;;  %852 = vadd.xlane.f32.xlu0 %v851_v43 }
 0x36a   : > { %v836_v27 = vpop.xlane.xlu2 %835 }
 0x36b   : > { %v876_v18 = vmul.f32 %v872_v22, %v836_v27  ;;  %v868_v41 = vadd.f32 %v864_v32, %v836_v27 }
 0x372   : > { %v839_v39 = vpop.xlane.xlu2 %838 }
 0x373   : > { %v877_v23 = vmul.f32 %v873_v11, %v839_v39  ;;  %v869_v9 = vadd.f32 %v865_v24, %v839_v39 }
 0x374   : > { %v859_v36 = vpop.xlane.xlu0 %858 }
 0x375   : > { %v881_v19 = vadd.f32 %v877_v23, %v859_v36 }
 0x377   : > { %v889_v45 = vadd.f32 %v885_v13, %v881_v19 }
 0x37a   : > { %v856_v12 = vpop.xlane.xlu2 %855 }
 0x37b   : > { %v880_v40 = vadd.f32 %v876_v18, %v856_v12 }
 0x37c   : > { %v862_v26 = vpop.xlane.xlu1 %861  ;;  %v842_v28 = vpop.xlane.xlu0 %841 }
 0x37d   : > { %v878_v29 = vmul.f32 %v874_v20, %v842_v28  ;;  %v870_v30 = vadd.f32 %v866_v21, %v842_v28  ;;  %v888_v52 = vadd.f32 %v884_v38, %v880_v40 }
 0x37f   : > { %903 = vmatpush.msrb.mxu2 %v870_v30  ;;  %v882_v10 = vadd.f32 %v878_v29, %v862_v26 }
 0x381   : > { %904 = vmatpush.msrb.mxu2 %v869_v9  ;;  %v890_v42 = vadd.f32 %v886_v33, %v882_v10 }
 0x383   : > { %905 = vmatpush.msrb.mxu2 %v868_v41  ;;  %932 = vmatpush.msrb.mxu3 %v890_v42 }
 0x384   : > { %v833_v7 = vpop.xlane.xlu1 %832  ;;  %v853_v56 = vpop.xlane.xlu0 %852 }
 0x385   : > { %v875_v8 = vmul.f32 %v871_v37, %v833_v7  ;;  %933 = vmatpush.msrb.mxu3 %v889_v45  ;;  %v867_v47 = vadd.f32 %v863_v44, %v833_v7  ;;  %v1939_v7 = vld [vmem:[%s2913_s7 + $0x28] sm:$0xff] }
 0x387   : > { %v879_v31 = vadd.f32 %v875_v8, %v853_v56  ;;  %906 = vmatpush.msrb.mxu2 %v867_v47  ;;  %934 = vmatpush.msrb.mxu3 %v888_v52 }
 0x388   : > { %1954 = vmatmul.msk.f32.vlgmr.msrb.gmra.mxu2 %vm521_vm2, %v2254_v63 }
 0x389   : > { %v887_v46 = vadd.f32 %v883_v55, %v879_v31 }
 0x38b   : > { %935 = vmatpush.msrb.mxu3 %v887_v46 }
 0x38c   : > { %1958 = vmatmul.msk.f32.vlgmr.msrb.gmra.mxu3 %vm521_vm2, %v2254_v63 }
 0x390   : > { %1955 = vmatmul.msk.f32.gmra.mxu2 %vm521_vm2, %v2262_v14 }
 0x394   : > { %1959 = vmatmul.msk.f32.gmra.mxu3 %vm521_vm2, %v2262_v14 }
 0x398   : > { %1956 = vmatmul.msk.f32.gmra.mxu2 %vm521_vm2, %v2271_v15 }
 0x39c   : > { %1960 = vmatmul.msk.f32.gmra.mxu3 %vm521_vm2, %v2271_v15 }
 0x3a0   : > { %1957 = vmatmul.msk.f32.gmra.mxu2 %vm521_vm2, %v2280_v16 }
 0x3a4   : > { %1961 = vmatmul.msk.f32.gmra.mxu3 %vm521_vm2, %v2280_v16 }
 0x40b   : > { %v908_v58 = vpop.f32.mrf.mxu2 }
 0x40c   : > { %v2463_v63 = vmul.f32 %v908_v58, %v2288_v25 }
 0x40e   : > { %v957_v14 = vmul.f32 %v2463_v63, %v2463_v63 }
 0x40f   : > { %v937_v59 = vpop.f32.mrf.mxu3 }
 0x410   : > { %v953_v62 = vmul.f32 %v937_v59, %v2288_v25 }
 0x412   : > { %v961_v15 = vsub.f32 %v953_v62, %v957_v14  ;;  %v1940_v62 = vld [vmem:[%s2913_s7 + $0x30] sm:$0xff] }
 0x413   : > { %v911_v0 = vpop.f32.mrf.mxu2 }
 0x414   : > { %v2469_v1 = vmul.f32 %v911_v0, %v2288_v25  ;;  %v965_v3 = vmax.f32 %v961_v15, 0.0 }
 0x416   : > { %v958_v2 = vmul.f32 %v2469_v1, %v2469_v1  ;;  %v2475_v36 = vadd.f32 1e-05, %v965_v3 }
 0x417   : > { %v940_v35 = vpop.f32.mrf.mxu3 }
 0x418   : > { %v954_v57 = vmul.f32 %v940_v35, %v2288_v25  ;;  %vm979_vm8 = vweird.f32 %v2475_v36 }
 0x41a   : > { %v962_v4 = vsub.f32 %v954_v57, %v958_v2 }
 0x41b   : > { %v914_v43 = vpop.f32.mrf.mxu2 }
 0x41c   : > { %v966_v27 = vmax.f32 %v962_v4, 0.0  ;;  %v951_v39 = vmul.f32 %v914_v43, %v2288_v25  ;;  %v1944_v4 = vld [vmem:[%s2914_s8 + $0x30] sm:$0xff] }
 0x41e   : > { %v970_v11 = vadd.f32 1e-05, %v966_v27  ;;  %v959_v20 = vmul.f32 %v951_v39, %v951_v39  ;;  %v1019_v35 = vsub.f32 %v2417_v5, %v951_v39  ;;  %v1938_v5 = vld [vmem:[%s2913_s7 + $0x20] sm:$0xff] }
 0x41f   : > { %v943_v21 = vpop.f32.mrf.mxu3 }
 0x420   : > { %2055 = vrsqrt.f32 %v970_v11  ;;  %v955_v22 = vmul.f32 %v943_v21, %v2288_v25  ;;  %vm989_vm1 = vweird.f32 %v970_v11  ;;  %v1941_v21 = vld [vmem:[%s2913_s7 + $0x38] sm:$0xff] }
 0x421   : > { %2057 = vrsqrt.f32 %v2475_v36 }
 0x422   : > { %v963_v23 = vsub.f32 %v955_v22, %v959_v20 }
 0x423   : > { %v917_v24 = vpop.f32.mrf.mxu2 }
 0x424   : > { %v967_v26 = vmax.f32 %v963_v23, 0.0  ;;  %v2480_v28 = vmul.f32 %v917_v24, %v2288_v25 }
 0x426   : > { %v2056_v29 = vpop.eup %2055  ;;  %v971_v30 = vadd.f32 1e-05, %v967_v26  ;;  %v960_v32 = vmul.f32 %v2480_v28, %v2480_v28 }
 0x427   : > { %v984_v33 = vmul.f32 %v2056_v29, %v970_v11  ;;  %v946_v12 = vpop.f32.mrf.mxu3  ;;  %v2058_v13 = vpop.eup %2057  ;;  %vm990_vm0 = vweird.f32 %v2056_v29 }
 0x428   : > { %2059 = vrsqrt.f32 %v971_v30  ;;  %v956_v18 = vmul.f32 %v946_v12, %v2288_v25  ;;  %v974_v10 = vmul.f32 %v2058_v13, %v2475_v36  ;;  %vm991_vm3 = vmor %vm989_vm1, %vm990_vm0  ;;  %vm999_vm5 = vweird.f32 %v971_v30 }
 0x429   : > { %v985_v19 = vmul.f32 %v2056_v29, %v984_v33  ;;  %vm980_vm7 = vweird.f32 %v2058_v13  ;;  %v1020_v36 = vsub.f32 %v2422_v6, %v2480_v28  ;;  %v1017_v6 = vsub.f32 %v2439_v34, %v2463_v63 }
 0x42a   : > { %v964_v9 = vsub.f32 %v956_v18, %v960_v32  ;;  %v975_v44 = vmul.f32 %v2058_v13, %v974_v10  ;;  %vm981_vm10 = vmor %vm979_vm8, %vm980_vm7 }
 0x42b   : > { %v986_v37 = vmul.f32 0.5, %v985_v19  ;;  %v1942_v19 = vld [vmem:[%s2914_s8 + $0x20] sm:$0xff] }
 0x42c   : > { %v968_v38 = vmax.f32 %v964_v9, 0.0  ;;  %v976_v56 = vmul.f32 0.5, %v975_v44 }
 0x42d   : > { %v987_v40 = vsub.f32 1.5, %v986_v37 }
 0x42e   : > { %v2060_v41 = vpop.eup %2059  ;;  %v972_v42 = vadd.f32 1e-05, %v968_v38  ;;  %v977_v59 = vsub.f32 1.5, %v976_v56 }
 0x42f   : > { %v994_v45 = vmul.f32 %v2060_v41, %v971_v30  ;;  %v988_v8 = vmul.f32 %v2056_v29, %v987_v40  ;;  %vm1000_vm4 = vweird.f32 %v2060_v41  ;;  %v1018_v30 = vsub.f32 %v2428_v17, %v2469_v1 }
 0x430   : > { %2061 = vrsqrt.f32 %v972_v42  ;;  %vm1001_vm6 = vmor %vm999_vm5, %vm1000_vm4  ;;  %v978_v43 = vmul.f32 %v2058_v13, %v977_v59  ;;  %vm1009_vm11 = vweird.f32 %v972_v42 }
 0x431   : > { %v995_v47 = vmul.f32 %v2060_v41, %v994_v45  ;;  %v992_v52 = vsel %vm991_vm3, %v2056_v29, %v988_v8  ;;  %v1945_v29 = vld [vmem:[%s2914_s8 + $0x38] sm:$0xff] }
 0x432   : > { %v1014_v55 = vmul.f32 %v1939_v7, %v992_v52  ;;  %v982_v39 = vsel %vm981_vm10, %v2058_v13, %v978_v43  ;;  %v1943_v13 = vld [vmem:[%s2914_s8 + $0x28] sm:$0xff] }
 0x433   : > { %v996_v31 = vmul.f32 0.5, %v995_v47  ;;  %v1013_v24 = vmul.f32 %v1938_v5, %v982_v39 }
 0x434   : > { %1036 = vperm.xlu1 %2044, %v1014_v55   ;;  %v1022_v12 = vmul.f32 %v1018_v30, %v1014_v55 }
 0x435   : > { %v997_v46 = vsub.f32 1.5, %v996_v31  ;;  %v1021_v18 = vmul.f32 %v1017_v6, %v1013_v24 }
 0x436   : > { %v2062_v58 = vpop.eup %2061  ;;  %v1026_v28 = vadd.f32 %v1943_v13, %v1022_v12 }
 0x437   : > { %v1004_v14 = vmul.f32 %v2062_v58, %v972_v42  ;;  %v998_v0 = vmul.f32 %v2060_v41, %v997_v46  ;;  %vm1010_vm9 = vweird.f32 %v2062_v58  ;;  %v1025_v17 = vadd.f32 %v1942_v19, %v1021_v18 }
 0x438   : > { %vm1011_vm12 = vmor %vm1009_vm11, %vm1010_vm9 }
 0x439   : > { %v1005_v15 = vmul.f32 %v2062_v58, %v1004_v14  ;;  %v1002_v2 = vsel %vm1001_vm6, %v2060_v41, %v998_v0 }
 0x43a   : > { %v1015_v57 = vmul.f32 %v1940_v62, %v1002_v2  ;;  %v1962_v2 = vld [vmem:[%s2909_s3 + $0x20] sm:$0xff] }
 0x43b   : > { %v1006_v3 = vmul.f32 0.5, %v1005_v15 }
 0x43c   : > { %1041 = vperm.xlu2 %2043, %v1015_v57   ;;  %v1023_v27 = vmul.f32 %v1019_v35, %v1015_v57  ;;  %v1965_v35 = vld [vmem:[%s2909_s3 + $0x38] sm:$0xff] }
 0x43d   : > { %v1007_v11 = vsub.f32 1.5, %v1006_v3 }
 0x43e   : > { %v1027_v20 = vadd.f32 %v1944_v4, %v1023_v27 }
 0x43f   : > { %v1008_v22 = vmul.f32 %v2062_v58, %v1007_v11 }
 0x440   : > { %1069 = vperm.xlu0 %2042, %v1027_v20  }
 0x441   : > { %v1012_v23 = vsel %vm1011_vm12, %v2062_v58, %v1008_v22 }
 0x442   : > { %v1016_v26 = vmul.f32 %v1941_v21, %v1012_v23 }
 0x444   : > { %1031 = vperm.xlu2 %2043, %v1013_v24   ;;  %1046 = vperm.xlu1 %2044, %v1016_v26   ;;  %v1024_v32 = vmul.f32 %v1020_v36, %v1016_v26 }
 0x446   : > { %v1028_v33 = vadd.f32 %v1945_v29, %v1024_v32 }
 0x448   : > { %1074 = vperm.xlu0 %2042, %v1028_v33  }
 0x44c   : > { %1064 = vperm.xlu1 %2044, %v1026_v28  }
 0x450   : > { %1059 = vperm.xlu0 %2042, %v1025_v17  }
 0x496   : > { %v1042_v10 = vpop.permute.xlu2 %1041 }
 0x497   : > { %v1053_v38 = vmul.f32 %v1042_v10, %v2384_v53  ;;  %v1054_v40 = vmul.f32 %v1042_v10, %v2386_v54  ;;  %v2599_v10 = vld [vmem:[%s2910_s4 + $0x28] sm:$0xff] }
 0x49e   : > { %v1032_v56 = vpop.permute.xlu2 %1031 }
 0x4a6   : > { %v1037_v1 = vpop.permute.xlu1 %1036 }
 0x4a7   : > { %v1051_v8 = vmul.f32 %v1037_v1, %v2378_v50  ;;  %v1052_v47 = vmul.f32 %v1037_v1, %v2380_v51  ;;  %v2589_v1 = vld [vmem:[%s2910_s4 + $0x30] sm:$0xff] }
 0x4b2   : > { %v1070_v9 = vpop.permute.xlu0 %1069 }
 0x4b3   : > { %v1081_v42 = vadd.f32 %v1070_v9, %v1053_v38  ;;  %v1082_v44 = vadd.f32 %v1070_v9, %v1054_v40  ;;  %v2594_v9 = vld [vmem:[%s2910_s4 + $0x38] sm:$0xff] }
 0x4b4   : > { %v1218_v38 = vmul.f32 256.0, %v2594_v9  ;;  %v1226_v40 = vmul.f32 2.0, %v2594_v9 }
 0x4b5   : > { %v1089_v53 = vmax.f32 %v1081_v42, 0.0  ;;  %v1090_v46 = vmax.f32 %v1082_v44, 0.0 }
 0x4b6   : > { %v1047_v37 = vpop.permute.xlu1 %1046 }
 0x4b7   : > { %v1055_v34 = vmul.f32 %v1047_v37, %v2398_v60  ;;  %v1056_v63 = vmul.f32 %v1047_v37, %v2400_v61  ;;  %v1049_v60 = vmul.f32 %v1032_v56, %v2374_v48  ;;  %v1050_v61 = vmul.f32 %v1032_v56, %v2376_v49  ;;  %v1963_v48 = vld [vmem:[%s2909_s3 + $0x28] sm:$0xff]  ;;  %v1964_v49 = vld [vmem:[%s2909_s3 + $0x30] sm:$0xff] }
 0x4b8   : > { %v1225_v37 = vmul.f32 2.0, %v2589_v1 }
 0x4ba   : > { %v1075_v41 = vpop.permute.xlu0 %1074 }
 0x4bb   : > { %v1083_v45 = vadd.f32 %v1075_v41, %v1055_v34  ;;  %v1084_v7 = vadd.f32 %v1075_v41, %v1056_v63  ;;  %v1217_v34 = vmul.f32 256.0, %v2589_v1  ;;  %v1216_v63 = vmul.f32 256.0, %v2599_v10 }
 0x4bd   : > { %v1091_v52 = vmax.f32 %v1083_v45, 0.0  ;;  %v1092_v55 = vmax.f32 %v1084_v7, 0.0  ;;  %v1237_v56 = vmul.f32 %v2589_v1, %v1217_v34 }
 0x4be   : > { %v1065_v31 = vpop.permute.xlu1 %1064 }
 0x4bf   : > { %v1079_v54 = vadd.f32 %v1065_v31, %v1051_v8  ;;  %v1080_v58 = vadd.f32 %v1065_v31, %v1052_v47  ;;  %1137 = vmatpush.msra.mxu0 %v1091_v52  ;;  %1166 = vmatpush.msra.mxu1 %v1092_v55  ;;  %v1238_v8 = vmul.f32 %v2594_v9, %v1218_v38  ;;  %v1224_v47 = vmul.f32 2.0, %v2599_v10 }
 0x4c1   : > { %v1087_v59 = vmax.f32 %v1079_v54, 0.0  ;;  %v1088_v14 = vmax.f32 %v1080_v58, 0.0  ;;  %1138 = vmatpush.msra.mxu0 %v1089_v53  ;;  %1167 = vmatpush.msra.mxu1 %v1090_v46  ;;  %v2612_v46 = vld [vmem:[%s2910_s4 + $0x20] sm:$0xff] }
 0x4c2   : > { %v1060_v50 = vpop.permute.xlu0 %1059 }
 0x4c3   : > { %v1077_v51 = vadd.f32 %v1060_v50, %v1049_v60  ;;  %v1078_v62 = vadd.f32 %v1060_v50, %v1050_v61  ;;  %1139 = vmatpush.msra.mxu0 %v1087_v59  ;;  %1168 = vmatpush.msra.mxu1 %v1088_v14  ;;  %v1236_v60 = vmul.f32 %v2599_v10, %v1216_v63  ;;  %v1215_v14 = vmul.f32 256.0, %v2612_v46 }
 0x4c4   : > { %v1223_v50 = vmul.f32 2.0, %v2612_v46 }
 0x4c5   : > { %v1085_v0 = vmax.f32 %v1077_v51, 0.0  ;;  %v1086_v15 = vmax.f32 %v1078_v62, 0.0 }
 0x4c7   : > { %1140 = vmatpush.msra.mxu0 %v1085_v0  ;;  %1169 = vmatpush.msra.mxu1 %v1086_v15 }
 0x4c8   : > { %1978 = vmatmul.msk.f32.vlgmr.msra.gmra.mxu0 %vm521_vm2, %v1962_v2  ;;  %1982 = vmatmul.msk.f32.vlgmr.msra.gmra.mxu1 %vm521_vm2, %v1962_v2  ;;  %v1235_v2 = vmul.f32 %v2612_v46, %v1215_v14 }
 0x4d0   : > { %1979 = vmatmul.msk.f32.gmra.mxu0 %vm521_vm2, %v1963_v48  ;;  %1983 = vmatmul.msk.f32.gmra.mxu1 %vm521_vm2, %v1963_v48 }
 0x4d8   : > { %1980 = vmatmul.msk.f32.gmra.mxu0 %vm521_vm2, %v1964_v49  ;;  %1984 = vmatmul.msk.f32.gmra.mxu1 %vm521_vm2, %v1964_v49 }
 0x4e0   : > { %1981 = vmatmul.msk.f32.gmra.mxu0 %vm521_vm2, %v1965_v35  ;;  %1985 = vmatmul.msk.f32.gmra.mxu1 %vm521_vm2, %v1965_v35 }
 0x545   : > { %v2546_v57 = vpop.f32.mrf.mxu0  ;;  %v2548_v3 = vpop.f32.mrf.mxu1 }
 0x546   : > { %v1195_v32 = vmul.f32 %v2546_v57, %v2546_v57  ;;  %v1196_v33 = vmul.f32 %v2548_v3, %v2548_v3  ;;  %v1183_v18 = vadd.f32 %v2548_v3, %v2546_v57 }
 0x548   : > { %v1203_v6 = vadd.f32 %v1196_v33, %v1195_v32 }
 0x54d   : > { %v2550_v4 = vpop.f32.mrf.mxu0  ;;  %v2552_v43 = vpop.f32.mrf.mxu1 }
 0x54e   : > { %v1186_v27 = vadd.f32 %v2552_v43, %v2550_v4  ;;  %v1197_v12 = vmul.f32 %v2550_v4, %v2550_v4  ;;  %v1198_v13 = vmul.f32 %v2552_v43, %v2552_v43 }
 0x550   : > { %1187 = vadd.xlane.f32.xlu2 %v1186_v27  ;;  %v1206_v28 = vadd.f32 %v1198_v13, %v1197_v12 }
 0x555   : > { %v2556_v11 = vpop.f32.mrf.mxu0  ;;  %v2558_v20 = vpop.f32.mrf.mxu1 }
 0x556   : > { %v1189_v5 = vadd.f32 %v2558_v20, %v2556_v11  ;;  %v1199_v39 = vmul.f32 %v2556_v11, %v2556_v11  ;;  %v1200_v21 = vmul.f32 %v2558_v20, %v2558_v20 }
 0x558   : > { %1190 = vadd.xlane.f32.xlu1 %v1189_v5  ;;  %v1209_v36 = vadd.f32 %v1200_v21, %v1199_v39  ;;  %v2621_v5 = vld [vmem:[%s2915_s9] sm:$0xff]  ;;  %v2630_v21 = vld [vmem:[%s2915_s9 + $0x8] sm:$0xff] }
 0x55d   : > { %v2566_v22 = vpop.f32.mrf.mxu0  ;;  %v2568_v23 = vpop.f32.mrf.mxu1 }
 0x55e   : > { %v1192_v24 = vadd.f32 %v2568_v23, %v2566_v22  ;;  %v1201_v26 = vmul.f32 %v2566_v22, %v2566_v22  ;;  %v1202_v29 = vmul.f32 %v2568_v23, %v2568_v23 }
 0x560   : > { %1210 = vadd.xlane.f32.xlu1 %v1209_v36  ;;  %1193 = vadd.xlane.f32.xlu2 %v1192_v24  ;;  %v1212_v30 = vadd.f32 %v1202_v29, %v1201_v26  ;;  %v2639_v36 = vld [vmem:[%s2915_s9 + $0x10] sm:$0xff]  ;;  %v2650_v24 = vld [vmem:[%s2915_s9 + $0x18] sm:$0xff] }
 0x562   : > { %1213 = vadd.xlane.f32.xlu0 %v1212_v30 }
 0x568   : > { %1204 = vadd.xlane.f32.xlu1 %v1203_v6  ;;  %1207 = vadd.xlane.f32.xlu2 %v1206_v28 }
 0x56a   : > { %1184 = vadd.xlane.f32.xlu0 %v1183_v18 }
 0x5c3   : > { %v1188_v19 = vpop.xlane.xlu2 %1187 }
 0x5c4   : > { %v1220_v54 = vadd.f32 %v1216_v63, %v1188_v19  ;;  %v1228_v61 = vmul.f32 %v1224_v47, %v1188_v19 }
 0x5cb   : > { %v1191_v17 = vpop.xlane.xlu1 %1190 }
 0x5cc   : > { %v1229_v44 = vmul.f32 %v1225_v37, %v1191_v17  ;;  %v1221_v55 = vadd.f32 %v1217_v34, %v1191_v17 }
 0x5d3   : > { %v1211_v41 = vpop.xlane.xlu1 %1210  ;;  %v1194_v42 = vpop.xlane.xlu2 %1193 }
 0x5d4   : > { %v1222_v45 = vadd.f32 %v1218_v38, %v1194_v42  ;;  %v1230_v7 = vmul.f32 %v1226_v40, %v1194_v42  ;;  %v1233_v31 = vadd.f32 %v1229_v44, %v1211_v41 }
 0x5d5   : > { %v1214_v52 = vpop.xlane.xlu0 %1213 }
 0x5d6   : > { %v1234_v53 = vadd.f32 %v1230_v7, %v1214_v52  ;;  %1255 = vmatpush.msra.mxu2 %v1222_v45  ;;  %v1241_v59 = vadd.f32 %v1237_v56, %v1233_v31 }
 0x5d8   : > { %v1242_v58 = vadd.f32 %v1238_v8, %v1234_v53  ;;  %1256 = vmatpush.msra.mxu2 %v1221_v55 }
 0x5da   : > { %1257 = vmatpush.msra.mxu2 %v1220_v54  ;;  %1284 = vmatpush.msra.mxu3 %v1242_v58 }
 0x5db   : > { %v1208_v51 = vpop.xlane.xlu2 %1207  ;;  %v1205_v35 = vpop.xlane.xlu1 %1204 }
 0x5dc   : > { %v1232_v62 = vadd.f32 %v1228_v61, %v1208_v51  ;;  %1285 = vmatpush.msra.mxu3 %v1241_v59 }
 0x5dd   : > { %v1185_v0 = vpop.xlane.xlu0 %1184 }
 0x5de   : > { %v1240_v15 = vadd.f32 %v1236_v60, %v1232_v62  ;;  %v1219_v48 = vadd.f32 %v1215_v14, %v1185_v0  ;;  %v1227_v49 = vmul.f32 %v1223_v50, %v1185_v0 }
 0x5e0   : > { %v1231_v27 = vadd.f32 %v1227_v49, %v1205_v35  ;;  %1258 = vmatpush.msra.mxu2 %v1219_v48  ;;  %1286 = vmatpush.msra.mxu3 %v1240_v15  ;;  %v1971_v48 = vld [vmem:[%s2913_s7 + $0x48] sm:$0xff] }
 0x5e1   : > { %1986 = vmatmul.msk.f32.vlgmr.msra.gmra.mxu2 %vm521_vm2, %v2621_v5 }
 0x5e2   : > { %v1239_v39 = vadd.f32 %v1235_v2, %v1231_v27 }
 0x5e4   : > { %1287 = vmatpush.msra.mxu3 %v1239_v39 }
 0x5e5   : > { %1990 = vmatmul.msk.f32.vlgmr.msra.gmra.mxu3 %vm521_vm2, %v2621_v5 }
 0x5e9   : > { %1987 = vmatmul.msk.f32.gmra.mxu2 %vm521_vm2, %v2630_v21 }
 0x5ed   : > { %1991 = vmatmul.msk.f32.gmra.mxu3 %vm521_vm2, %v2630_v21 }
 0x5f1   : > { %1988 = vmatmul.msk.f32.gmra.mxu2 %vm521_vm2, %v2639_v36 }
 0x5f5   : > { %1992 = vmatmul.msk.f32.gmra.mxu3 %vm521_vm2, %v2639_v36 }
 0x5f9   : > { %1989 = vmatmul.msk.f32.gmra.mxu2 %vm521_vm2, %v2280_v16 }
 0x5fd   : > { %1993 = vmatmul.msk.f32.gmra.mxu3 %vm521_vm2, %v2650_v24 }
 0x664   : > { %v1260_v26 = vpop.f32.mrf.mxu2 }
 0x665   : > { %v2655_v29 = vmul.f32 %v1260_v26, %v2288_v25 }
 0x667   : > { %v1309_v32 = vmul.f32 %v2655_v29, %v2655_v29 }
 0x668   : > { %v1289_v30 = vpop.f32.mrf.mxu3 }
 0x669   : > { %v1305_v33 = vmul.f32 %v1289_v30, %v2288_v25 }
 0x66b   : > { %v1313_v13 = vsub.f32 %v1305_v33, %v1309_v32 }
 0x66c   : > { %v1263_v12 = vpop.f32.mrf.mxu2 }
 0x66d   : > { %v2661_v16 = vmul.f32 %v1263_v12, %v2288_v25  ;;  %v1317_v19 = vmax.f32 %v1313_v13, 0.0 }
 0x66f   : > { %v1310_v6 = vmul.f32 %v2661_v16, %v2661_v16  ;;  %v1321_v34 = vadd.f32 1e-05, %v1317_v19 }
 0x670   : > { %v1292_v28 = vpop.f32.mrf.mxu3 }
 0x671   : > { %v1306_v18 = vmul.f32 %v1292_v28, %v2288_v25  ;;  %vm1331_vm5 = vweird.f32 %v1321_v34 }
 0x673   : > { %v1314_v17 = vsub.f32 %v1306_v18, %v1310_v6  ;;  %v1972_v6 = vld [vmem:[%s2913_s7 + $0x50] sm:$0xff] }
 0x674   : > { %v1266_v37 = vpop.f32.mrf.mxu2 }
 0x675   : > { %v1318_v38 = vmax.f32 %v1314_v17, 0.0  ;;  %v2667_v40 = vmul.f32 %v1266_v37, %v2288_v25 }
 0x677   : > { %v1322_v63 = vadd.f32 1e-05, %v1318_v38  ;;  %v1311_v41 = vmul.f32 %v2667_v40, %v2667_v40 }
 0x678   : > { %v1295_v42 = vpop.f32.mrf.mxu3 }
 0x679   : > { %2063 = vrsqrt.f32 %v1322_v63  ;;  %v1307_v44 = vmul.f32 %v1295_v42, %v2288_v25  ;;  %vm1341_vm14 = vweird.f32 %v1322_v63 }
 0x67a   : > { %2065 = vrsqrt.f32 %v1321_v34 }
 0x67b   : > { %v1315_v45 = vsub.f32 %v1307_v44, %v1311_v41  ;;  %v1976_v44 = vld [vmem:[%s2914_s8 + $0x50] sm:$0xff] }
 0x67c   : > { %v1269_v7 = vpop.f32.mrf.mxu2 }
 0x67d   : > { %v1319_v8 = vmax.f32 %v1315_v45, 0.0  ;;  %v2673_v47 = vmul.f32 %v1269_v7, %v2288_v25  ;;  %v1973_v45 = vld [vmem:[%s2913_s7 + $0x58] sm:$0xff] }
 0x67f   : > { %v2064_v52 = vpop.eup %2063  ;;  %v1323_v55 = vadd.f32 1e-05, %v1319_v8  ;;  %v1312_v56 = vmul.f32 %v2673_v47, %v2673_v47  ;;  %v1372_v8 = vsub.f32 %v2594_v9, %v2673_v47  ;;  %v1370_v9 = vsub.f32 %v2599_v10, %v2661_v16 }
 0x680   : > { %v1336_v31 = vmul.f32 %v2064_v52, %v1322_v63  ;;  %v1298_v53 = vpop.f32.mrf.mxu3  ;;  %v2066_v54 = vpop.eup %2065  ;;  %vm1342_vm13 = vweird.f32 %v2064_v52  ;;  %v1371_v63 = vsub.f32 %v2589_v1, %v2667_v40  ;;  %v1970_v1 = vld [vmem:[%s2913_s7 + $0x40] sm:$0xff] }
 0x681   : > { %2067 = vrsqrt.f32 %v1323_v55  ;;  %v1308_v58 = vmul.f32 %v1298_v53, %v2288_v25  ;;  %v1326_v59 = vmul.f32 %v2066_v54, %v1321_v34  ;;  %vm1343_vm15 = vmor %vm1341_vm14, %vm1342_vm13  ;;  %vm1351_vm1 = vweird.f32 %v1323_v55 }
 0x682   : > { %v1337_v60 = vmul.f32 %v2064_v52, %v1336_v31  ;;  %vm1332_vm4 = vweird.f32 %v2066_v54  ;;  %v1977_v31 = vld [vmem:[%s2914_s8 + $0x58] sm:$0xff]  ;;  %v1369_v53 = vsub.f32 %v2612_v46, %v2655_v29 }
 0x683   : > { %v1316_v61 = vsub.f32 %v1308_v58, %v1312_v56  ;;  %v1327_v15 = vmul.f32 %v2066_v54, %v1326_v59  ;;  %vm1333_vm7 = vmor %vm1331_vm5, %vm1332_vm4 }
 0x684   : > { %v1338_v14 = vmul.f32 0.5, %v1337_v60 }
 0x685   : > { %v1320_v50 = vmax.f32 %v1316_v61, 0.0  ;;  %v1328_v26 = vmul.f32 0.5, %v1327_v15  ;;  %v1974_v61 = vld [vmem:[%s2914_s8 + $0x40] sm:$0xff] }
 0x686   : > { %v1339_v51 = vsub.f32 1.5, %v1338_v14  ;;  %v1975_v14 = vld [vmem:[%s2914_s8 + $0x48] sm:$0xff] }
 0x687   : > { %v2068_v62 = vpop.eup %2067  ;;  %v1324_v0 = vadd.f32 1e-05, %v1320_v50  ;;  %v1329_v12 = vsub.f32 1.5, %v1328_v26 }
 0x688   : > { %v1346_v2 = vmul.f32 %v2068_v62, %v1323_v55  ;;  %v1340_v49 = vmul.f32 %v2064_v52, %v1339_v51  ;;  %vm1352_vm0 = vweird.f32 %v2068_v62 }
 0x689   : > { %2069 = vrsqrt.f32 %v1324_v0  ;;  %vm1353_vm3 = vmor %vm1351_vm1, %vm1352_vm0  ;;  %v1330_v37 = vmul.f32 %v2066_v54, %v1329_v12  ;;  %vm1361_vm8 = vweird.f32 %v1324_v0 }
 0x68a   : > { %v1347_v35 = vmul.f32 %v2068_v62, %v1346_v2  ;;  %v1344_v27 = vsel %vm1343_vm15, %v2064_v52, %v1340_v49 }
 0x68b   : > { %v1366_v39 = vmul.f32 %v1971_v48, %v1344_v27  ;;  %v1334_v40 = vsel %vm1333_vm7, %v2066_v54, %v1330_v37  ;;  %vm1852_vm7 = vcmask 1043456  }
 0x68c   : > { %v1348_v30 = vmul.f32 0.5, %v1347_v35  ;;  %v1365_v56 = vmul.f32 %v1970_v1, %v1334_v40 }
 0x68d   : > { %1388 = vperm.xlu0 %2042, %v1366_v39   ;;  %v1374_v59 = vmul.f32 %v1370_v9, %v1366_v39 }
 0x68e   : > { %v1349_v32 = vsub.f32 1.5, %v1348_v30  ;;  %v1373_v54 = vmul.f32 %v1369_v53, %v1365_v56 }
 0x68f   : > { %v2070_v33 = vpop.eup %2069  ;;  %v1378_v46 = vadd.f32 %v1975_v14, %v1374_v59 }
 0x690   : > { %v1356_v13 = vmul.f32 %v2070_v33, %v1324_v0  ;;  %v1350_v28 = vmul.f32 %v2068_v62, %v1349_v32  ;;  %vm1362_vm6 = vweird.f32 %v2070_v33  ;;  %v1377_v47 = vadd.f32 %v1974_v61, %v1373_v54 }
 0x691   : > { %vm1363_vm9 = vmor %vm1361_vm8, %vm1362_vm6 }
 0x692   : > { %v1357_v18 = vmul.f32 %v2070_v33, %v1356_v13  ;;  %v1354_v19 = vsel %vm1353_vm3, %v2068_v62, %v1350_v28 }
 0x693   : > { %v1367_v17 = vmul.f32 %v1972_v6, %v1354_v19 }
 0x694   : > { %v1358_v38 = vmul.f32 0.5, %v1357_v18 }
 0x695   : > { %1393 = vperm.xlu2 %2043, %v1367_v17   ;;  %v1375_v42 = vmul.f32 %v1371_v63, %v1367_v17  ;;  %v1997_v63 = vld [vmem:[%s2909_s3 + $0x58] sm:$0xff] }
 0x696   : > { %v1359_v41 = vsub.f32 1.5, %v1358_v38  ;;  %v1996_v38 = vld [vmem:[%s2909_s3 + $0x50] sm:$0xff] }
 0x697   : > { %v1379_v52 = vadd.f32 %v1976_v44, %v1375_v42 }
 0x698   : > { %v1360_v7 = vmul.f32 %v2070_v33, %v1359_v41 }
 0x69a   : > { %v1364_v34 = vsel %vm1363_vm9, %v2070_v33, %v1360_v7 }
 0x69b   : > { %v1368_v55 = vmul.f32 %v1973_v45, %v1364_v34 }
 0x69d   : > { %1421 = vperm.xlu2 %2043, %v1379_v52   ;;  %1398 = vperm.xlu0 %2042, %v1368_v55   ;;  %v1376_v58 = vmul.f32 %v1372_v8, %v1368_v55 }
 0x69f   : > { %v1380_v60 = vadd.f32 %v1977_v31, %v1376_v58 }
 0x6a1   : > { %1426 = vperm.xlu1 %2044, %v1380_v60  }
 0x6a5   : > { %1411 = vperm.xlu2 %2043, %v1377_v47   ;;  %1383 = vperm.xlu0 %2042, %v1365_v56  }
 0x6a9   : > { %1416 = vperm.xlu1 %2044, %v1378_v46  }
 0x6ef   : > { %v1394_v29 = vpop.permute.xlu2 %1393 }
 0x6f0   : > { %v1405_v0 = vmul.f32 %v1394_v29, %v2556_v11  ;;  %v1406_v15 = vmul.f32 %v1394_v29, %v2558_v20 }
 0x6f7   : > { %v1422_v62 = vpop.permute.xlu2 %1421 }
 0x6f8   : > { %v1433_v48 = vadd.f32 %v1422_v62, %v1405_v0  ;;  %v1434_v49 = vadd.f32 %v1422_v62, %v1406_v15  ;;  %v2781_v62 = vld [vmem:[%s2910_s4 + $0x50] sm:$0xff]  ;;  %v2786_v0 = vld [vmem:[%s2910_s4 + $0x58] sm:$0xff]  ;;  %v2791_v15 = vld [vmem:[%s2910_s4 + $0x48] sm:$0xff] }
 0x6fa   : > { %v1441_v32 = vmax.f32 %v1433_v48, 0.0  ;;  %v1442_v33 = vmax.f32 %v1434_v49, 0.0  ;;  %v1569_v48 = vmul.f32 256.0, %v2781_v62  ;;  %v1568_v49 = vmul.f32 256.0, %v2791_v15 }
 0x6ff   : > { %v1389_v50 = vpop.permute.xlu0 %1388 }
 0x700   : > { %v1403_v20 = vmul.f32 %v1389_v50, %v2550_v4  ;;  %v1994_v4 = vld [vmem:[%s2909_s3 + $0x40] sm:$0xff] }
 0x70f   : > { %v1399_v51 = vpop.permute.xlu0 %1398 }
 0x710   : > { %v1407_v10 = vmul.f32 %v1399_v51, %v2566_v22  ;;  %v1408_v16 = vmul.f32 %v1399_v51, %v2568_v23  ;;  %v1404_v22 = vmul.f32 %v1389_v50, %v2552_v43  ;;  %v1412_v23 = vpop.permute.xlu2 %1411  ;;  %v1995_v43 = vld [vmem:[%s2909_s3 + $0x48] sm:$0xff] }
 0x713   : > { %v1427_v2 = vpop.permute.xlu1 %1426 }
 0x714   : > { %v1435_v35 = vadd.f32 %v1427_v2, %v1407_v10  ;;  %v1436_v27 = vadd.f32 %v1427_v2, %v1408_v16  ;;  %v1577_v10 = vmul.f32 2.0, %v2781_v62  ;;  %v1570_v16 = vmul.f32 256.0, %v2786_v0 }
 0x715   : > { %v1578_v2 = vmul.f32 2.0, %v2786_v0 }
 0x716   : > { %v1443_v39 = vmax.f32 %v1435_v35, 0.0  ;;  %v1444_v26 = vmax.f32 %v1436_v27, 0.0 }
 0x717   : > { %v1384_v30 = vpop.permute.xlu0 %1383 }
 0x718   : > { %v1401_v12 = vmul.f32 %v1384_v30, %v2546_v57  ;;  %v1402_v11 = vmul.f32 %v1384_v30, %v2548_v3  ;;  %1489 = vmatpush.msrb.mxu0 %v1443_v39  ;;  %1518 = vmatpush.msrb.mxu1 %v1444_v26 }
 0x71a   : > { %1490 = vmatpush.msrb.mxu0 %v1441_v32  ;;  %1519 = vmatpush.msrb.mxu1 %v1442_v33  ;;  %v1429_v6 = vadd.f32 %v1412_v23, %v1401_v12  ;;  %v1430_v28 = vadd.f32 %v1412_v23, %v1402_v11  ;;  %v1590_v32 = vmul.f32 %v2786_v0, %v1570_v16  ;;  %v1576_v33 = vmul.f32 2.0, %v2791_v15 }
 0x71b   : > { %v1417_v13 = vpop.permute.xlu1 %1416 }
 0x71c   : > { %v1431_v18 = vadd.f32 %v1417_v13, %v1403_v20  ;;  %v1432_v19 = vadd.f32 %v1417_v13, %v1404_v22  ;;  %v1437_v57 = vmax.f32 %v1429_v6, 0.0  ;;  %v1438_v3 = vmax.f32 %v1430_v28, 0.0  ;;  %v2804_v13 = vld [vmem:[%s2910_s4 + $0x40] sm:$0xff] }
 0x71d   : > { %v1589_v20 = vmul.f32 %v2781_v62, %v1569_v48 }
 0x71e   : > { %v1439_v17 = vmax.f32 %v1431_v18, 0.0  ;;  %v1440_v37 = vmax.f32 %v1432_v19, 0.0  ;;  %v1588_v18 = vmul.f32 %v2791_v15, %v1568_v49 }
 0x720   : > { %1491 = vmatpush.msrb.mxu0 %v1439_v17  ;;  %1520 = vmatpush.msrb.mxu1 %v1440_v37  ;;  %v1567_v37 = vmul.f32 256.0, %v2804_v13 }
 0x722   : > { %1492 = vmatpush.msrb.mxu0 %v1437_v57  ;;  %1521 = vmatpush.msrb.mxu1 %v1438_v3  ;;  %v1575_v57 = vmul.f32 2.0, %v2804_v13 }
 0x723   : > { %2010 = vmatmul.msk.f32.vlgmr.msrb.gmra.mxu0 %vm521_vm2, %v1994_v4  ;;  %2014 = vmatmul.msk.f32.vlgmr.msrb.gmra.mxu1 %vm521_vm2, %v1994_v4 }
 0x72b   : > { %2011 = vmatmul.msk.f32.gmra.mxu0 %vm521_vm2, %v1995_v43  ;;  %2015 = vmatmul.msk.f32.gmra.mxu1 %vm521_vm2, %v1995_v43 }
 0x733   : > { %2012 = vmatmul.msk.f32.gmra.mxu0 %vm521_vm2, %v1996_v38  ;;  %2016 = vmatmul.msk.f32.gmra.mxu1 %vm521_vm2, %v1996_v38 }
 0x73b   : > { %2013 = vmatmul.msk.f32.gmra.mxu0 %vm521_vm2, %v1997_v63  ;;  %2017 = vmatmul.msk.f32.gmra.mxu1 %vm521_vm2, %v1997_v63  ;;  %v1587_v63 = vmul.f32 %v2804_v13, %v1567_v37 }
 0x7a0   : > { %v2738_v41 = vpop.f32.mrf.mxu0  ;;  %v2740_v42 = vpop.f32.mrf.mxu1 }
 0x7a1   : > { %v1547_v61 = vmul.f32 %v2738_v41, %v2738_v41  ;;  %v1548_v9 = vmul.f32 %v2740_v42, %v2740_v42  ;;  %v1535_v29 = vadd.f32 %v2740_v42, %v2738_v41 }
 0x7a3   : > { %v1555_v14 = vadd.f32 %v1548_v9, %v1547_v61 }
 0x7a8   : > { %v2742_v44 = vpop.f32.mrf.mxu0  ;;  %v2744_v45 = vpop.f32.mrf.mxu1 }
 0x7a9   : > { %v1538_v7 = vadd.f32 %v2744_v45, %v2742_v44  ;;  %v1549_v47 = vmul.f32 %v2742_v44, %v2742_v44  ;;  %v1550_v59 = vmul.f32 %v2744_v45, %v2744_v45 }
 0x7ab   : > { %1539 = vadd.xlane.f32.xlu0 %v1538_v7  ;;  %v1558_v46 = vadd.f32 %v1550_v59, %v1549_v47 }
 0x7b0   : > { %v2748_v1 = vpop.f32.mrf.mxu0  ;;  %v2750_v40 = vpop.f32.mrf.mxu1 }
 0x7b1   : > { %v1541_v34 = vadd.f32 %v2750_v40, %v2748_v1  ;;  %v1551_v8 = vmul.f32 %v2748_v1, %v2748_v1  ;;  %v1552_v52 = vmul.f32 %v2750_v40, %v2750_v40 }
 0x7b3   : > { %1542 = vadd.xlane.f32.xlu1 %v1541_v34  ;;  %v1561_v31 = vadd.f32 %v1552_v52, %v1551_v8 }
 0x7b8   : > { %v2758_v55 = vpop.f32.mrf.mxu0  ;;  %v2760_v56 = vpop.f32.mrf.mxu1 }
 0x7b9   : > { %v1544_v53 = vadd.f32 %v2760_v56, %v2758_v55  ;;  %v1553_v58 = vmul.f32 %v2758_v55, %v2758_v55  ;;  %v1554_v60 = vmul.f32 %v2760_v56, %v2760_v56 }
 0x7bb   : > { %1562 = vadd.xlane.f32.xlu1 %v1561_v31  ;;  %1545 = vadd.xlane.f32.xlu0 %v1544_v53  ;;  %v1564_v54 = vadd.f32 %v1554_v60, %v1553_v58 }
 0x7bd   : > { %1565 = vadd.xlane.f32.xlu2 %v1564_v54 }
 0x7c3   : > { %1556 = vadd.xlane.f32.xlu1 %v1555_v14  ;;  %1559 = vadd.xlane.f32.xlu0 %v1558_v46 }
 0x7c5   : > { %1536 = vadd.xlane.f32.xlu2 %v1535_v29 }
 0x81e   : > { %v1540_v50 = vpop.xlane.xlu0 %1539 }
 0x81f   : > { %v1572_v6 = vadd.f32 %v1568_v49, %v1540_v50  ;;  %v1580_v19 = vmul.f32 %v1576_v33, %v1540_v50 }
 0x826   : > { %v1543_v51 = vpop.xlane.xlu1 %1542 }
 0x827   : > { %v1581_v39 = vmul.f32 %v1577_v10, %v1543_v51  ;;  %v1573_v11 = vadd.f32 %v1569_v48, %v1543_v51 }
 0x82e   : > { %v1563_v35 = vpop.xlane.xlu1 %1562  ;;  %v1546_v27 = vpop.xlane.xlu0 %1545 }
 0x82f   : > { %v1574_v26 = vadd.f32 %v1570_v16, %v1546_v27  ;;  %v1582_v30 = vmul.f32 %v1578_v2, %v1546_v27  ;;  %v1585_v22 = vadd.f32 %v1581_v39, %v1563_v35 }
 0x830   : > { %v1566_v12 = vpop.xlane.xlu2 %1565 }
 0x831   : > { %v1586_v23 = vadd.f32 %v1582_v30, %v1566_v12  ;;  %1607 = vmatpush.msrb.mxu2 %v1574_v26  ;;  %v1593_v17 = vadd.f32 %v1589_v20, %v1585_v22 }
 0x833   : > { %v1594_v28 = vadd.f32 %v1590_v32, %v1586_v23  ;;  %1608 = vmatpush.msrb.mxu2 %v1573_v11 }
 0x835   : > { %1609 = vmatpush.msrb.mxu2 %v1572_v6  ;;  %1636 = vmatpush.msrb.mxu3 %v1594_v28 }
 0x836   : > { %v1560_v3 = vpop.xlane.xlu0 %1559  ;;  %v1557_v8 = vpop.xlane.xlu1 %1556 }
 0x837   : > { %v1584_v4 = vadd.f32 %v1580_v19, %v1560_v3  ;;  %1637 = vmatpush.msrb.mxu3 %v1593_v17 }
 0x838   : > { %v1537_v43 = vpop.xlane.xlu2 %1536 }
 0x839   : > { %v1592_v38 = vadd.f32 %v1588_v18, %v1584_v4  ;;  %v1571_v7 = vadd.f32 %v1567_v37, %v1537_v43  ;;  %v1579_v34 = vmul.f32 %v1575_v57, %v1537_v43  ;;  %v2003_v4 = vld [vmem:[%s2913_s7 + $0x68] sm:$0xff] }
 0x83b   : > { %v1583_v52 = vadd.f32 %v1579_v34, %v1557_v8  ;;  %1610 = vmatpush.msrb.mxu2 %v1571_v7  ;;  %1638 = vmatpush.msrb.mxu3 %v1592_v38 }
 0x83c   : > { %2018 = vmatmul.msk.f32.vlgmr.msrb.gmra.mxu2 %vm521_vm2, %v2621_v5 }
 0x83d   : > { %v1591_v31 = vadd.f32 %v1587_v63, %v1583_v52 }
 0x83f   : > { %1639 = vmatpush.msrb.mxu3 %v1591_v31 }
 0x840   : > { %2022 = vmatmul.msk.f32.vlgmr.msrb.gmra.mxu3 %vm521_vm2, %v2621_v5 }
 0x844   : > { %2019 = vmatmul.msk.f32.gmra.mxu2 %vm521_vm2, %v2630_v21 }
 0x848   : > { %2023 = vmatmul.msk.f32.gmra.mxu3 %vm521_vm2, %v2630_v21 }
 0x84c   : > { %2020 = vmatmul.msk.f32.gmra.mxu2 %vm521_vm2, %v2639_v36 }
 0x850   : > { %2024 = vmatmul.msk.f32.gmra.mxu3 %vm521_vm2, %v2639_v36 }
 0x854   : > { %2021 = vmatmul.msk.f32.gmra.mxu2 %vm521_vm2, %v2650_v24 }
 0x858   : > { %2025 = vmatmul.msk.f32.gmra.mxu3 %vm521_vm2, %v2650_v24 }
 0x8bf   : > { %v1612_v53 = vpop.f32.mrf.mxu2 }
 0x8c0   : > { %v2827_v5 = vmul.f32 %v1612_v53, %v2288_v25 }
 0x8c2   : > { %v1661_v21 = vmul.f32 %v2827_v5, %v2827_v5 }
 0x8c3   : > { %v1641_v58 = vpop.f32.mrf.mxu3 }
 0x8c4   : > { %v1657_v60 = vmul.f32 %v1641_v58, %v2288_v25  ;;  %v2004_v58 = vld [vmem:[%s2913_s7 + $0x70] sm:$0xff] }
 0x8c6   : > { %v1665_v36 = vsub.f32 %v1657_v60, %v1661_v21 }
 0x8c7   : > { %v1615_v54 = vpop.f32.mrf.mxu2 }
 0x8c8   : > { %v2833_v61 = vmul.f32 %v1615_v54, %v2288_v25  ;;  %v1669_v59 = vmax.f32 %v1665_v36, 0.0 }
 0x8ca   : > { %v1662_v9 = vmul.f32 %v2833_v61, %v2833_v61  ;;  %v2839_v51 = vadd.f32 1e-05, %v1669_v59 }
 0x8cb   : > { %v1644_v47 = vpop.f32.mrf.mxu3 }
 0x8cc   : > { %v1658_v24 = vmul.f32 %v1644_v47, %v2288_v25  ;;  %vm1683_vm1 = vweird.f32 %v2839_v51 }
 0x8ce   : > { %v1666_v14 = vsub.f32 %v1658_v24, %v1662_v9  ;;  %v2008_v24 = vld [vmem:[%s2914_s8 + $0x70] sm:$0xff] }
 0x8cf   : > { %v1618_v46 = vpop.f32.mrf.mxu2 }
 0x8d0   : > { %v1670_v29 = vmax.f32 %v1666_v14, 0.0  ;;  %v1655_v50 = vmul.f32 %v1618_v46, %v2288_v25 }
 0x8d2   : > { %v1674_v10 = vadd.f32 1e-05, %v1670_v29  ;;  %v1663_v16 = vmul.f32 %v1655_v50, %v1655_v50  ;;  %v1723_v36 = vsub.f32 %v2781_v62, %v1655_v50  ;;  %v2002_v62 = vld [vmem:[%s2913_s7 + $0x60] sm:$0xff] }
 0x8d3   : > { %v1647_v2 = vpop.f32.mrf.mxu3 }
 0x8d4   : > { %2071 = vrsqrt.f32 %v1674_v10  ;;  %v1659_v48 = vmul.f32 %v1647_v2, %v2288_v25  ;;  %vm1693_vm11 = vweird.f32 %v1674_v10 }
 0x8d5   : > { %2073 = vrsqrt.f32 %v2839_v51 }
 0x8d6   : > { %v1667_v49 = vsub.f32 %v1659_v48, %v1663_v16 }
 0x8d7   : > { %v1621_v35 = vpop.f32.mrf.mxu2 }
 0x8d8   : > { %v1671_v27 = vmax.f32 %v1667_v49, 0.0  ;;  %v2844_v39 = vmul.f32 %v1621_v35, %v2288_v25  ;;  %v2009_v35 = vld [vmem:[%s2914_s8 + $0x78] sm:$0xff] }
 0x8da   : > { %v2072_v26 = vpop.eup %2071  ;;  %v1675_v30 = vadd.f32 1e-05, %v1671_v27  ;;  %v1664_v32 = vmul.f32 %v2844_v39, %v2844_v39 }
 0x8db   : > { %v1688_v33 = vmul.f32 %v2072_v26, %v1674_v10  ;;  %v1650_v12 = vpop.f32.mrf.mxu3  ;;  %v2074_v11 = vpop.eup %2073  ;;  %vm1694_vm10 = vweird.f32 %v2072_v26  ;;  %v2005_v10 = vld [vmem:[%s2913_s7 + $0x78] sm:$0xff] }
 0x8dc   : > { %2075 = vrsqrt.f32 %v1675_v30  ;;  %v1660_v20 = vmul.f32 %v1650_v12, %v2288_v25  ;;  %v1678_v6 = vmul.f32 %v2074_v11, %v2839_v51  ;;  %vm1695_vm12 = vmor %vm1693_vm11, %vm1694_vm10  ;;  %vm1703_vm14 = vweird.f32 %v1675_v30  ;;  %v2006_v12 = vld [vmem:[%s2914_s8 + $0x60] sm:$0xff] }
 0x8dd   : > { %v1689_v22 = vmul.f32 %v2072_v26, %v1688_v33  ;;  %vm1684_vm0 = vweird.f32 %v2074_v11  ;;  %v1724_v51 = vsub.f32 %v2786_v0, %v2844_v39  ;;  %v1798_v0 = vld [vmem:[%s2912_s6] sm:$0x7] }
 0x8de   : > { %v1668_v23 = vsub.f32 %v1660_v20, %v1664_v32  ;;  %v1679_v57 = vmul.f32 %v2074_v11, %v1678_v6  ;;  %vm1685_vm4 = vmor %vm1683_vm1, %vm1684_vm0  ;;  %v1722_v32 = vsub.f32 %v2791_v15, %v2833_v61 }
 0x8df   : > { %v1690_v28 = vmul.f32 0.5, %v1689_v22 }
 0x8e0   : > { %v1672_v18 = vmax.f32 %v1668_v23, 0.0  ;;  %v1680_v7 = vmul.f32 0.5, %v1679_v57 }
 0x8e1   : > { %v1691_v19 = vsub.f32 1.5, %v1690_v28 }
 0x8e2   : > { %v2076_v17 = vpop.eup %2075  ;;  %v1676_v37 = vadd.f32 1e-05, %v1672_v18  ;;  %v1681_v31 = vsub.f32 1.5, %v1680_v7 }
 0x8e3   : > { %v1698_v3 = vmul.f32 %v2076_v17, %v1675_v30  ;;  %v1692_v43 = vmul.f32 %v2072_v26, %v1691_v19  ;;  %vm1704_vm13 = vweird.f32 %v2076_v17  ;;  %v1721_v30 = vsub.f32 %v2804_v13, %v2827_v5 }
 0x8e4   : > { %2077 = vrsqrt.f32 %v1676_v37  ;;  %vm1705_vm15 = vmor %vm1703_vm14, %vm1704_vm13  ;;  %v1682_v59 = vmul.f32 %v2074_v11, %v1681_v31  ;;  %vm1713_vm5 = vweird.f32 %v1676_v37 }
 0x8e5   : > { %v1699_v25 = vmul.f32 %v2076_v17, %v1698_v3  ;;  %v1696_v38 = vsel %vm1695_vm12, %v2072_v26, %v1692_v43 }
 0x8e6   : > { %v1718_v63 = vmul.f32 %v2003_v4, %v1696_v38  ;;  %v1686_v50 = vsel %vm1685_vm4, %v2074_v11, %v1682_v59  ;;  %v2007_v11 = vld [vmem:[%s2914_s8 + $0x68] sm:$0xff] }
 0x8e7   : > { %v1700_v34 = vmul.f32 0.5, %v1699_v25  ;;  %v1717_v48 = vmul.f32 %v2002_v62, %v1686_v50 }
 0x8e8   : > { %1740 = vperm.xlu0 %2042, %v1718_v63   ;;  %v1726_v33 = vmul.f32 %v1722_v32, %v1718_v63 }
 0x8e9   : > { %v1701_v8 = vsub.f32 1.5, %v1700_v34  ;;  %v1725_v39 = vmul.f32 %v1721_v30, %v1717_v48 }
 0x8ea   : > { %v2078_v52 = vpop.eup %2077  ;;  %v1730_v5 = vadd.f32 %v2007_v11, %v1726_v33 }
 0x8eb   : > { %v1708_v53 = vmul.f32 %v2078_v52, %v1676_v37  ;;  %v1702_v21 = vmul.f32 %v2076_v17, %v1701_v8  ;;  %vm1714_vm3 = vweird.f32 %v2078_v52  ;;  %v1729_v13 = vadd.f32 %v2006_v12, %v1725_v39 }
 0x8ec   : > { %vm1715_vm6 = vmor %vm1713_vm5, %vm1714_vm3 }
 0x8ed   : > { %v1709_v60 = vmul.f32 %v2078_v52, %v1708_v53  ;;  %v1706_v54 = vsel %vm1705_vm15, %v2076_v17, %v1702_v21 }
 0x8ee   : > { %v1719_v9 = vmul.f32 %v2004_v58, %v1706_v54 }
 0x8ef   : > { %v1710_v47 = vmul.f32 0.5, %v1709_v60 }
 0x8f0   : > { %1745 = vperm.xlu0 %2042, %v1719_v9   ;;  %v1727_v14 = vmul.f32 %v1723_v36, %v1719_v9 }
 0x8f1   : > { %v1711_v46 = vsub.f32 1.5, %v1710_v47 }
 0x8f2   : > { %v1731_v29 = vadd.f32 %v2008_v24, %v1727_v14 }
 0x8f3   : > { %v1712_v16 = vmul.f32 %v2078_v52, %v1711_v46 }
 0x8f4   : > { %1773 = vperm.xlu2 %2043, %v1731_v29  }
 0x8f5   : > { %v1716_v2 = vsel %vm1715_vm6, %v2078_v52, %v1712_v16 }
 0x8f6   : > { %v1720_v49 = vmul.f32 %v2005_v10, %v1716_v2 }
 0x8f8   : > { %1735 = vperm.xlu0 %2042, %v1717_v48   ;;  %v1728_v27 = vmul.f32 %v1724_v51, %v1720_v49 }
 0x8fa   : > { %v1732_v26 = vadd.f32 %v2009_v35, %v1728_v27 }
 0x8fc   : > { %1750 = vperm.xlu2 %2043, %v1720_v49   ;;  %1778 = vperm.xlu1 %2044, %v1732_v26  }
 0x900   : > { %1801 = vperm.xlu0 %2042, %v1798_v0  }
 0x904   : > { %1763 = vperm.xlu2 %2043, %v1729_v13   ;;  %1768 = vperm.xlu1 %2044, %v1730_v5  }
 0x94e   : > { %v1774_v61 = vpop.permute.xlu2 %1773 }
 0x956   : > { %v1751_v22 = vpop.permute.xlu2 %1750 }
 0x957   : > { %v1759_v28 = vmul.f32 %v1751_v22, %v2758_v55  ;;  %v1760_v18 = vmul.f32 %v1751_v22, %v2760_v56 }
 0x95a   : > { %v1741_v15 = vpop.permute.xlu0 %1740 }
 0x95b   : > { %v1755_v55 = vmul.f32 %v1741_v15, %v2742_v44  ;;  %v1756_v56 = vmul.f32 %v1741_v15, %v2744_v45  ;;  %v1797_v44 = vld [vmem:[%s2911_s5] sm:$0x7] }
 0x95e   : > { %v1764_v7 = vpop.permute.xlu2 %1763 }
 0x962   : > { %v1746_v20 = vpop.permute.xlu0 %1745 }
 0x963   : > { %v1757_v23 = vmul.f32 %v1746_v20, %v2748_v1  ;;  %v1758_v6 = vmul.f32 %v1746_v20, %v2750_v40 }
 0x965   : > { %v1785_v17 = vadd.f32 %v1774_v61, %v1757_v23  ;;  %v1786_v37 = vadd.f32 %v1774_v61, %v1758_v6 }
 0x967   : > { %v1793_v1 = vmax.f32 %v1785_v17, 0.0  ;;  %v1794_v40 = vmax.f32 %v1786_v37, 0.0 }
 0x96a   : > { %v1736_v4 = vpop.permute.xlu0 %1735 }
 0x96b   : > { %v1753_v38 = vmul.f32 %v1736_v4, %v2738_v41  ;;  %v1754_v63 = vmul.f32 %v1736_v4, %v2740_v42 }
 0x96d   : > { %v1781_v8 = vadd.f32 %v1764_v7, %v1753_v38  ;;  %v1782_v52 = vadd.f32 %v1764_v7, %v1754_v63 }
 0x96e   : > { %v1779_v19 = vpop.permute.xlu1 %1778 }
 0x96f   : > { %v1787_v57 = vadd.f32 %v1779_v19, %v1759_v28  ;;  %v1788_v3 = vadd.f32 %v1779_v19, %v1760_v18  ;;  %v1789_v42 = vmax.f32 %v1781_v8, 0.0  ;;  %v1790_v21 = vmax.f32 %v1782_v52, 0.0 }
 0x971   : > { %v1795_v43 = vmax.f32 %v1787_v57, 0.0  ;;  %v1796_v25 = vmax.f32 %v1788_v3, 0.0 }
 0x972   : > { %v1802_v45 = vpop.permute.xlu0 %1801 }
 0x973   : > { %1819 = vmatpush.msra.mxu0 %v1795_v43  ;;  %1839 = vmatpush.msra.mxu1 %v1796_v25 }
 0x975   : > { %1820 = vmatpush.msra.mxu0 %v1793_v1  ;;  %1840 = vmatpush.msra.mxu1 %v1794_v40 }
 0x976   : > { %v1769_v34 = vpop.permute.xlu1 %1768 }
 0x977   : > { %v1783_v31 = vadd.f32 %v1769_v34, %v1755_v55  ;;  %v1784_v53 = vadd.f32 %v1769_v34, %v1756_v56 }
 0x979   : > { %v1791_v58 = vmax.f32 %v1783_v31, 0.0  ;;  %v1792_v41 = vmax.f32 %v1784_v53, 0.0 }
 0x97b   : > { %1821 = vmatpush.msra.mxu0 %v1791_v58  ;;  %1841 = vmatpush.msra.mxu1 %v1792_v41 }
 0x97d   : > { %1822 = vmatpush.msra.mxu0 %v1789_v42  ;;  %1842 = vmatpush.msra.mxu1 %v1790_v21 }
 0x97e   : > { %2026 = vmatmul.msk.f32.vlgmr.msra.gmra.mxu0 %vm521_vm2, %v1797_v44  ;;  %2027 = vmatmul.msk.f32.vlgmr.msra.gmra.mxu1 %vm521_vm2, %v1797_v44 }
 0x9fb   : > { %v1824_v60 = vpop.f32.mrf.mxu0  ;;  %v1844_v54 = vpop.f32.mrf.mxu1 }
 0x9fc   : > { %v1845_v36 = vadd.f32 %v1844_v54, %v1802_v45  ;;  %v1825_v9 = vadd.f32 %v1824_v60, %v1802_v45 }
 0x9fe   : > { %2079 = vtanh.f32 %v1845_v36 }
 0x9ff   : > { %2081 = vtanh.f32 %v1825_v9 }
 0xa04   : > { %v2080_v47 = vpop.eup %2079 }
 0xa05   : > { %v1851_v24 = vrot.slane %v2080_v47, 4  ;;  %v2082_v59 = vpop.eup %2081 }
 0xa07   : > { %v1853_v14 = vsel %vm1852_vm7, %v2082_v59, %v1851_v24 }
 0xa08   : > { %1855 = vst [vmem:[%s359_s16] sm:$0x77] %v1853_v14 }
 0xa09 PF: > { %s20_s13 = sadd.s32 1, %s2093_s13  }
 0xa0a   : > { %p17_p4 = scmp.ge.s32.totalorder %s20_s13, 4  }
 0xa0c   :  { %19 = sbr.rel (!%p17_p4) target bundleno = 1 (0x1), region = 100 }

</bundles_post_ra>
